<compile_context>
chip_gen: v6e
topology: v6e:2x2x1
jax: 0.10.0
libtpu: 0.0.40
codegen_flags: <defaults>
</compile_context>

<pallas_src>
import functools

import jax
import jax.numpy as jnp
from jax import lax
from jax.experimental import pallas as pl
from jax.experimental.pallas import tpu as pltpu


def _round_up(x, n):
    return ((x + n - 1) // n) * n


def _pick_tile(dim_padded, base, max_tile):
    """Largest divisor of `dim_padded` that is a multiple of `base` and <= max_tile.

    `dim_padded` must be a multiple of `base`, so `base` is always valid and
    no padding beyond the 8/128 alignment is ever required.
    """
    max_tile = min(max_tile, dim_padded)
    best = base
    cand = base
    while cand <= max_tile:
        if dim_padded % cand == 0:
            best = cand
        cand += base
    return best


# ----------------------------------------------------------------------------
# Kernels
# ----------------------------------------------------------------------------
def _cast(a, b, mxu_dtype):
    if mxu_dtype is not None:
        a = a.astype(mxu_dtype)
        b = b.astype(mxu_dtype)
    return a, b


def _zone_kernel_single_k(x_ref, w_ref, o_ref, *, mxu_dtype):
    # K covered by a single tile: no accumulation loop at all.
    a, b = _cast(x_ref[...], w_ref[...], mxu_dtype)
    o_ref[...] = lax.dot_general(
        a, b,
        dimension_numbers=(((1,), (1,)), ((), ())),   # NT contraction, native on MXU
        preferred_element_type=jnp.float32,
    ).astype(o_ref.dtype)


def _zone_kernel_acc_in_out(x_ref, w_ref, o_ref, *, mxu_dtype):
    # f32 output: the (K-resident) output block itself is the accumulator.
    @pl.when(pl.program_id(2) == 0)
    def _():
        o_ref[...] = jnp.zeros_like(o_ref)

    a, b = _cast(x_ref[...], w_ref[...], mxu_dtype)
    o_ref[...] += lax.dot_general(
        a, b,
        dimension_numbers=(((1,), (1,)), ((), ())),
        preferred_element_type=jnp.float32,
    )


def _zone_kernel_acc_scratch(x_ref, w_ref, o_ref, acc_ref, *, mxu_dtype):
    # Narrow output dtype: accumulate in an f32 VMEM scratch, cast at the end.
    @pl.when(pl.program_id(2) == 0)
    def _():
        acc_ref[...] = jnp.zeros_like(acc_ref)

    a, b = _cast(x_ref[...], w_ref[...], mxu_dtype)
    acc_ref[...] += lax.dot_general(
        a, b,
        dimension_numbers=(((1,), (1,)), ((), ())),
        preferred_element_type=jnp.float32,
    )

    @pl.when(pl.program_id(2) == pl.num_programs(2) - 1)
    def _():
        o_ref[...] = acc_ref[...].astype(o_ref.dtype)


# ----------------------------------------------------------------------------
# Pallas wrapper (takes already 8/128-aligned operands)
# ----------------------------------------------------------------------------
_TM_MAX = 512
_TN_MAX = 512
_INPUT_VMEM_BUDGET = 20 * 2**20   # double-buffered input tiles


def _zone_matmul_pallas(x2d_pad, w_pad, out_dtype, *, mxu_dtype, tk_cap=None):
    m_pad, k_pad = x2d_pad.shape
    n_pad = w_pad.shape[0]
    in_itemsize = jnp.dtype(x2d_pad.dtype).itemsize
    out_itemsize = jnp.dtype(out_dtype).itemsize

    # Tiles that exactly divide the aligned problem dims.
    tm = _pick_tile(m_pad, 8, _TM_MAX)
    tn = _pick_tile(n_pad, 128, _TN_MAX)

    # Keep >= 2 parallel output blocks so both v7x TensorCores get work
    # (negligible extra grid-step cost on single-core v5e/v6e).
    if (m_pad // tm) * (n_pad // tn) < 2:
        if m_pad >= 16:
            tm = _pick_tile(m_pad, 8, m_pad // 2)
        elif n_pad >= 256:
            tn = _pick_tile(n_pad, 128, n_pad // 2)

    # K tile: as much of K as the VMEM budget allows (often all of it).
    tk_budget = _INPUT_VMEM_BUDGET // (2 * (tm + tn) * in_itemsize)
    tk_allow = max(128, (tk_budget // 128) * 128)
    if tk_cap is not None:
        tk_allow = min(tk_allow, max(128, tk_cap))
    tk = _pick_tile(k_pad, 128, tk_allow)

    grid_m, grid_n, grid_k = m_pad // tm, n_pad // tn, k_pad // tk

    # Reuse-aware cost estimate: x is read once per N tile, W once per M tile.
    cost = pl.CostEstimate(
        flops=2 * m_pad * n_pad * k_pad,
        transcendentals=0,
        bytes_accessed=(m_pad * k_pad * in_itemsize * grid_n
                        + n_pad * k_pad * in_itemsize * grid_m
                        + m_pad * n_pad * out_itemsize),
    )

    use_scratch = (grid_k > 1) and (jnp.dtype(out_dtype) != jnp.dtype(jnp.float32))
    footprint = (2 * (tm + tn) * tk * in_itemsize        # double-buffered inputs
                 + 2 * tm * tn * out_itemsize            # double-buffered output
                 + (tm * tn * 4 if use_scratch else 0))  # accumulator scratch
    # Stay well inside v7x's 64 MiB physical VMEM; generous headroom elsewhere.
    vmem_limit = int(min(60 * 2**20, max(32 * 2**20, footprint + 12 * 2**20)))

    if grid_k == 1:
        kernel = functools.partial(_zone_kernel_single_k, mxu_dtype=mxu_dtype)
        grid = (grid_m, grid_n)
        in_specs = [pl.BlockSpec((tm, tk), lambda i, j: (i, 0)),
                    pl.BlockSpec((tn, tk), lambda i, j: (j, 0))]
        out_specs = pl.BlockSpec((tm, tn), lambda i, j: (i, j))
        scratch_shapes = []
        dim_sem = ("parallel", "parallel")
    else:
        grid = (grid_m, grid_n, grid_k)
        in_specs = [pl.BlockSpec((tm, tk), lambda i, j, kk: (i, kk)),
                    pl.BlockSpec((tn, tk), lambda i, j, kk: (j, kk))]
        out_specs = pl.BlockSpec((tm, tn), lambda i, j, kk: (i, j))
        dim_sem = ("parallel", "parallel", "arbitrary")
        if use_scratch:
            kernel = functools.partial(_zone_kernel_acc_scratch, mxu_dtype=mxu_dtype)
            scratch_shapes = [pltpu.VMEM((tm, tn), jnp.float32)]
        else:
            kernel = functools.partial(_zone_kernel_acc_in_out, mxu_dtype=mxu_dtype)
            scratch_shapes = []

    return pl.pallas_call(
        kernel,
        out_shape=jax.ShapeDtypeStruct((m_pad, n_pad), out_dtype),
        grid_spec=pltpu.PrefetchScalarGridSpec(
            num_scalar_prefetch=0,
            grid=grid,
            in_specs=in_specs,
            out_specs=out_specs,
            scratch_shapes=scratch_shapes,
        ),
        compiler_params=pltpu.CompilerParams(
            dimension_semantics=dim_sem,
            vmem_limit_bytes=vmem_limit,
        ),
        cost_estimate=cost,
    )(x2d_pad, w_pad)


# ----------------------------------------------------------------------------
# Module-level API
# ----------------------------------------------------------------------------
class Zone:
    """Bias-free linear layer  y = x @ W^T,  W: (out_features, in_features).

    The weight is padded to 128-aligned (out, in) once at construction, so the
    per-call path never re-pads / re-copies the parameter.
    """

    def __init__(self, weight, *, mxu_dtype=jnp.bfloat16):
        self.out_features, self.in_features = weight.shape
        self.weight = weight
        self.mxu_dtype = mxu_dtype
        self._use_pallas = self.in_features >= 128 and self.out_features >= 128
        if self._use_pallas:
            n_pad = _round_up(self.out_features, 128)
            k_pad = _round_up(self.in_features, 128)
            w = weight
            if (n_pad, k_pad) != tuple(weight.shape):
                w = jnp.pad(w, ((0, n_pad - self.out_features),
                                (0, k_pad - self.in_features)))
            self.weight_padded = w
        else:
            self.weight_padded = None

    def __call__(self, x, *, tk_cap=None):
        assert x.shape[-1] == self.in_features
        lead = x.shape[:-1]
        m = 1
        for d in lead:
            m *= d
        x2d = x.reshape(m, self.in_features)

        # Tiny problems: per-call / per-grid-step overhead and 128-lane padding
        # dominate — let XLA emit a fused dot.
        if not self._use_pallas or m < 8:
            out2d = lax.dot_general(
                x2d, self.weight,
                dimension_numbers=(((1,), (1,)), ((), ())),
                preferred_element_type=jnp.float32,
            ).astype(x.dtype)
            return out2d.reshape(*lead, self.out_features)

        m_pad = _round_up(m, 8)
        n_pad, k_pad = self.weight_padded.shape
        if (m_pad, k_pad) != x2d.shape:
            x2d = jnp.pad(x2d, ((0, m_pad - m), (0, k_pad - self.in_features)))

        out = _zone_matmul_pallas(x2d, self.weight_padded, x.dtype,
                                  mxu_dtype=self.mxu_dtype, tk_cap=tk_cap)
        if (m_pad, n_pad) != (m, self.out_features):
            out = out[:m, :self.out_features]
        return out.reshape(*lead, self.out_features)


def zone_forward(x, weight, *, mxu_dtype=jnp.bfloat16, tk_cap=None):
    """Functional form: y = x @ weight.T  (weight: (out, in))."""
    return Zone(weight, mxu_dtype=mxu_dtype)(x, tk_cap=tk_cap)


# ----------------------------------------------------------------------------
# Self-test
# ----------------------------------------------------------------------------
if __name__ == "__main__":
    key = jax.random.PRNGKey(0)
    k1, k2, k3, k4 = jax.random.split(key, 4)

    # --- Case 1: module-sized demo (tiny -> fused-XLA fallback path) ---------
    batch, seq = 2, 8
    input_size, output_size = 32, 16
    x_small = jax.random.normal(k1, (batch, seq, input_size), dtype=jnp.float32)
    bound = 1.0 / (input_size ** 0.5)
    w_small = jax.random.uniform(k2, (output_size, input_size), dtype=jnp.float32,
                                 minval=-bound, maxval=bound)
    layer_small = Zone(w_small)
    y_small = jax.block_until_ready(layer_small(x_small))
    ref_small = jnp.einsum("bsk,ok->bso", x_small, w_small)
    assert y_small.shape == (batch, seq, output_size)
    assert jnp.allclose(y_small, ref_small, atol=1e-2, rtol=1e-2)

    # --- Case 2: Pallas path, zero padding, K in one tile (tm=160,tn=384,tk=640)
    batch2, seq2 = 2, 160
    in2, out2 = 640, 384
    x_big = jax.random.normal(k3, (batch2, seq2, in2), dtype=jnp.float32)
    bound2 = 1.0 / (in2 ** 0.5)
    w_big = jax.random.uniform(k4, (out2, in2), dtype=jnp.float32,
                               minval=-bound2, maxval=bound2)
    layer_big = Zone(w_big)
    ref_big = jnp.einsum("bsk,ok->bso", x_big, w_big,
                         preferred_element_type=jnp.float32)
    y_big = jax.block_until_ready(layer_big(x_big))
    assert y_big.shape == (batch2, seq2, out2)
    assert jnp.allclose(y_big, ref_big, atol=1e-2, rtol=1e-2)

    # --- Case 3: force a multi-step K grid (f32 output accumulates in o_ref) -
    y_ksplit = jax.block_until_ready(layer_big(x_big, tk_cap=128))
    assert jnp.allclose(y_ksplit, ref_big, atol=1e-2, rtol=1e-2)

    # --- Case 4: bf16 inputs + K split -> scratch-accumulator kernel variant -
    layer_bf16 = Zone(w_big.astype(jnp.bfloat16))
    y_bf16 = jax.block_until_ready(
        layer_bf16(x_big.astype(jnp.bfloat16), tk_cap=128))
    assert y_bf16.dtype == jnp.bfloat16
    assert jnp.allclose(y_bf16.astype(jnp.float32), ref_big, atol=6e-2, rtol=6e-2)

    print("KERNEL_OK")
</pallas_src>

<mosaic_0001>
module attributes {stable_mosaic.version = 11 : i64} {
  func.func @_zone_kernel_single_k(%arg0: i32, %arg1: i32, %arg2: memref<160x640xf32, #tpu.memory_space<vmem>>, %arg3: memref<384x640xf32, #tpu.memory_space<vmem>>, %arg4: memref<160x384xf32, #tpu.memory_space<vmem>>) attributes {dimension_semantics = [#tpu.dimension_semantics<parallel>, #tpu.dimension_semantics<parallel>], iteration_bounds = array<i64: 2, 1>, scalar_prefetch = 0 : i64, scratch_operands = 0 : i64, tpu.core_type = #tpu.core_type<tc>, window_params = [{transform_indices = @transform_0, window_bounds = array<i64: 160, 640>}, {transform_indices = @transform_1, window_bounds = array<i64: 384, 640>}, {transform_indices = @transform_2, window_bounds = array<i64: 160, 384>}]} {
    %c0 = arith.constant 0 : index
    %c0_0 = arith.constant 0 : index
    %0 = vector.load %arg2[%c0, %c0_0] : memref<160x640xf32, #tpu.memory_space<vmem>>, vector<160x640xf32>
    %c0_1 = arith.constant 0 : index
    %c0_2 = arith.constant 0 : index
    %1 = vector.load %arg3[%c0_1, %c0_2] : memref<384x640xf32, #tpu.memory_space<vmem>>, vector<384x640xf32>
    %2 = arith.truncf %0 : vector<160x640xf32> to vector<160x640xbf16>
    %3 = arith.truncf %1 : vector<384x640xf32> to vector<384x640xbf16>
    %cst = arith.constant dense<0.000000e+00> : vector<160x384xf32>
    %4 = tpu.matmul %2, %3, %cst {dimension_numbers = #tpu.dot_dimension_numbers<[1], [1], [0], [0], [0, 0, 1, 0], [], []>} : vector<160x640xbf16>, vector<384x640xbf16>, vector<160x384xf32> -> vector<160x384xf32>
    %c0_3 = arith.constant 0 : index
    %c0_4 = arith.constant 0 : index
    %5 = vector.load %arg4[%c0_3, %c0_4] : memref<160x384xf32, #tpu.memory_space<vmem>>, vector<160x384xf32>
    tpu.vector_store %arg4[%c0_3, %c0_4], %4 {strides = array<i32>} : memref<160x384xf32, #tpu.memory_space<vmem>>, vector<160x384xf32>,
    return
  }
  func.func @transform_0(%arg0: i32, %arg1: i32) -> (i32, i32) {
    %c0_i32 = arith.constant 0 : i32
    %c0_i32_0 = arith.constant 0 : i32
    return %arg0, %c0_i32 : i32, i32
  }
  func.func @transform_1(%arg0: i32, %arg1: i32) -> (i32, i32) {
    %c0_i32 = arith.constant 0 : i32
    %c0_i32_0 = arith.constant 0 : i32
    return %arg1, %c0_i32 : i32, i32
  }
  func.func @transform_2(%arg0: i32, %arg1: i32) -> (i32, i32) {
    %c0_i32 = arith.constant 0 : i32
    return %arg0, %arg1 : i32, i32
  }
}

</mosaic_0001>

<bundles_post_ra>
// kernel: tpu_custom_call.1
= control target key start
LH: loop header
LB: loop body
LE: loop exit
PB: predicated region body
PF: predicated region fallthrough
CT: control target
= control target key end

     0   :  { %7 = vsyncpa [#allocation3], 0  ;;  %s2696_s0 = inlined_call_operand.hbm [shape: f32[320,640], index: 0, kind: input, shape index: {}]   ;;  %s2697_s1 = inlined_call_operand.hbm [shape: f32[384,640], index: 1, kind: input, shape index: {}]   ;;  %s2698_s2 = inlined_call_operand.hbm [shape: f32[320,384], index: 2, kind: output, shape index: {}]  }
   0x1   :  { %9 = vsyncpa [#allocation3 + $0x1], 0 }
   0x2   :  { %10 = vsyncpa [#allocation6], 0 }
   0x3   :  { %11 = vsyncpa [#allocation4], 0 }
   0x4   :  { %13 = vsyncpa [#allocation4 + $0x1], 0  ;;  %s1974_s9 = smov 0   ;;  %s1976_s10 = smov 0  }
   0x5   :  { %s1978_s11 = smov 0   ;;  %s1980_s12 = smov 0  }
   0x6   :  { %s1982_s13 = smov 0   ;;  %s1984_s14 = smov 0  }
   0x7 LB: > { %s1627_s15 = sadd.s32 4294967295, %s1950_s14   ;;  %s1628_s16 = sadd.s32 4294967294, %s1950_s14   ;;  %s1950_s14 = sphi %s1984_s14, %s19_s14   ;;  %s1946_s13 = sphi %s1982_s13, %s2714_s13   ;;  %s1942_s12 = sphi %s1980_s12, %s2713_s12   ;;  %s1938_s11 = sphi %s1978_s11, %s2712_s11   ;;  %s1934_s10 = sphi %s1976_s10, %s2711_s10   ;;  %s1930_s9 = sphi %s1974_s9, %s2710_s9  }
   0x8   : > { %p51_p0 = scmp.ne.s32.totalorder %s1934_s10, %s1930_s9  ;;  %p2008_p1 = scmp.eq.s32.totalorder %s1627_s15, 0 }
   0x9   : > { %p2012_p2 = scmp.eq.s32.totalorder %s1627_s15, 1  ;;  %p109_p3 = scmp.eq.s32.totalorder %s1628_s16, 1 }
   0xa   : > { %p2018_p4 = por %p2008_p1, %p51_p0  ;;  %p1629_p5 = scmp.ge.s32.totalorder %s1950_s14, 1 }
   0xb   : > { %p2023_p6 = por %p109_p3, %p51_p0  ;;  %p116_p7 = scmp.lt.s32.totalorder %s1950_s14, 3 }
   0xc   : > { %s2702_s19 = scalar_select %p2018_p4, 1, 0 }
   0xd   : > { %s2703_s20 = scalar_select %p2023_p6, 1, 0 }
   0xe   : > { %p2028_p8 = pnand %p1629_p5, %p116_p7  ;;  %s1952_s22 = smov [#allocation5]  }
   0xf   : > { %s132_s23 = sshll.u32 %s1952_s22, 4  ;;  %p1631_p10 = scmp.ge.s32.totalorder %s1950_s14, 2  ;;  %s133_s23 = int_to_ptr.vmem [resolvable:$true] %s132_s23 }
  0x10   : > { %p1741_p9 = pneg %p2028_p8  ;;  %s31_s25 = sadd.s32 1, %s1946_s13 }
  0x11   : > { %s1823_s26 = scalar_lea.vmem %s133_s23, 30720  ;;  %p1831_p5 = scmp.lt.s32.totalorder %s133_s23, %s133_s23 }
  0x12   : > { %p2037_p11 = pnand %p1741_p9, %p2008_p1  ;;  %p1824_p13 = scmp.ne.s32.totalorder %s133_s23, %s1823_s26 }
  0x13   : > { %p1832_p7 = scmp.lt.s32.totalorder %s1823_s26, %s1823_s26 }
  0x14   : > { %p1814_p12 = pneg %p2037_p11 }
  0x15   : > { %p1833_p6 = por %p1832_p7, %p1831_p5 }
  0x16   : > { %p1826_p0 = pnand %p1824_p13, %p1814_p12 }
  0x18   : > { %p1827_p3 = pneg %p1826_p0 }
  0x1a   : > { %p1834_p4 = pnand %p1833_p6, %p1827_p3 }
  0x1c   : > { %1837 = shalt.err (!%p1834_p4)
}
  0x1d   : > { %s1953_s27 = smov 640   ;;  %s1954_s28 = smov 40  }
  0x1e   : > { %1744 = dma.hbm_to_vmem [thread:$0]  (!%p2037_p11), %s2697_s1, 30720, %s133_s23, [#allocation6], %s1953_s27, %s1953_s27, %s1954_s28  }
  0x1f   : > { %p33_p4 = scmp.ge.s32.totalorder %s31_s25, 2  ;;  %s38_s3 = sadd.s32 1, %s1938_s11 }
  0x20   : > { %p45_p6 = scmp.ne.s32.totalorder %s1938_s11, %s1934_s10  ;;  %p46_p9 = scmp.eq.s32.totalorder %s1950_s14, 0 }
  0x21   : > { %s2716_s25 = smov (%p33_p4, %s31_s25), 0  ;;  %p1754_p0 = scmp.lt.s32.totalorder %s1950_s14, 2 }
  0x22   : > { %p47_p12 = por %p46_p9, %p45_p6  ;;  %p2060_p13 = por %p2012_p2, %p45_p6 }
  0x23   : > { %s35_s5 = ssub.s32 %s1946_s13, %s2716_s25  ;;  %s146_s6 = sand.u32 1, %s1938_s11  }
  0x24   : > { %p36_p3 = scmp.eq.s32.totalorder %s35_s5, 0  ;;  %s1728_s7 = smul.u32 800, %s146_s6 }
  0x25   : > { %s1755_s15 = smul.u32 12800, %s1946_s13  ;;  %p2072_p11 = pnand %p1754_p0, %p47_p12 }
  0x26   : > { %s2069_s8 = scalar_select %p36_p3, %s1938_s11, %s38_s3  }
  0x27   : > { %s150_s16 = scalar_lea.vmem [#allocation2], %s1728_s7  ;;  %s157_s26 = scalar_lea.hbm %s2696_s0, %s1755_s15 }
  0x28   : > { %s158_s22 = sshll.u32 %s150_s16, 4  ;;  %s147_s29 = scalar_lea.sflag [#allocation3], %s146_s6  ;;  %s159_s22 = int_to_ptr.vmem [resolvable:$true] %s158_s22 }
  0x29   : > { %p1840_p2 = pneg %p2072_p11  ;;  %s1851_s30 = scalar_lea.vmem %s159_s22, 12800 }
  0x2a   : > { %p1852_p5 = scmp.ne.s32.totalorder %s159_s22, %s1851_s30  ;;  %s1955_s3 = smov [#allocation2]  }
  0x2b   : > { %s1856_s5 = sshll.u32 %s1955_s3, 4  ;;  %s1857_s5 = int_to_ptr.vmem [resolvable:$false] %s1856_s5 }
  0x2c   : > { %p1854_p7 = pnand %p1852_p5, %p1840_p2  ;;  %s1858_s7 = scalar_lea.vmem %s1857_s5, 25600 }
  0x2d   : > { %p1859_p6 = scmp.lt.s32.totalorder %s159_s22, %s1857_s5  ;;  %p1860_p9 = scmp.lt.s32.totalorder %s1858_s7, %s1851_s30 }
  0x2e   : > { %p1855_p4 = pneg %p1854_p7 }
  0x2f   : > { %p1861_p12 = por %p1860_p9, %p1859_p6 }
  0x31   : > { %p1862_p0 = pnand %p1861_p12, %p1855_p4 }
  0x33   : > { %1865 = shalt.err (!%p1862_p0)
}
  0x34   : > { %1748 = dma.hbm_to_vmem [thread:$0]  (!%p2072_p11), %s157_s26, 12800, %s159_s22, %s147_s29, %s1953_s27, %s1953_s27, %s1954_s28  }
  0x35   : > { %170 = sbr.rel (%p2028_p8) target bundleno = 640 (0x280), region = 28  ;;  %s2089_s6 = sand.u32 (!%p2028_p8), 1, %s1934_s10  }
  0x36   : > { %s1730_s15 = smul.u32 (!%p2028_p8), 800, %s2089_s6  ;;  %s173_s16 = scalar_lea.sflag (!%p2028_p8), [#allocation3], %s2089_s6 }
  0x37   : > { %p2708_p3 = scmp.ne.s32.totalorder (!%p2028_p8), %s2702_s19, 0 }
  0x38   : > { %s2093_s18 = scalar_lea.vmem (!%p2028_p8), [#allocation2], %s1730_s15 }
  0x3a   : > { %1917 = dma.done.wait (%p2708_p3), %s173_s16, 12800  }
  0x3b   : > { %1919 = vsyncadd (%p2708_p3), %s173_s16, 4294954496 }
  0x3c   : > { %1921 = dma.done.wait (%p2008_p1), [#allocation6], 30720  }
  0x3d   : > { %1923 = vsyncadd (%p2008_p1), [#allocation6], 4294936576  ;;  %v377_v0 = vld [vmem:[#allocation5 + $0x238] sm:$0xff]  ;;  %v382_v1 = vld [vmem:[#allocation5 + $0x260] sm:$0xff]  ;;  %s1731_s17 = smul.u32 480, %s2089_s6  ;;  %s1956_s26 = smov [#allocation7]  }
  0x3e   : > { %v379_v2 = vld [vmem:[#allocation5 + $0x248] sm:$0xff]  ;;  %v632_v3 = vpack.c.bf16 %v382_v1, %v377_v0  ;;  %v384_v4 = vld [vmem:[#allocation5 + $0x270] sm:$0xff]  ;;  %v381_v6 = vld [vmem:[#allocation5 + $0x258] sm:$0xff]  ;;  %s1757_s21 = smul.u32 7680, %s1942_s12  ;;  %s1515_s12 = scalar_lea.sflag [#allocation4], %s2089_s6 }
  0x3f   : > { %v376_v5 = vld [vmem:[#allocation5 + $0x230] sm:$0xff]  ;;  %v634_v7 = vpack.c.bf16 %v384_v4, %v379_v2  ;;  %v378_v9 = vld [vmem:[#allocation5 + $0x240] sm:$0xff]  ;;  %v383_v10 = vld [vmem:[#allocation5 + $0x268] sm:$0xff]  ;;  %s2482_s19 = scalar_lea.vmem [#allocation7], %s1731_s17  ;;  %s1870_s29 = sshll.u32 %s1956_s26, 4  ;;  %s1871_s29 = int_to_ptr.vmem [resolvable:$false] %s1870_s29 }
  0x40   : > { %v631_v8 = vpack.c.bf16 %v381_v6, %v376_v5  ;;  %v367_v11 = vld [vmem:[#allocation5 + $0x1e8] sm:$0xff]  ;;  %716 = vmatprep.subr.bf16.mxu0 %v632_v3  ;;  %v633_v12 = vpack.c.bf16 %v383_v10, %v378_v9  ;;  %v372_v13 = vld [vmem:[#allocation5 + $0x210] sm:$0xff]  ;;  %v369_v14 = vld [vmem:[#allocation5 + $0x1f8] sm:$0xff]  ;;  %s1531_s27 = sshll.u32 %s2482_s19, 4  ;;  %s2645_s23 = scalar_lea.hbm %s2698_s2, %s1757_s21  ;;  %s2647_s27 = int_to_ptr.vmem [resolvable:$true] %s1531_s27 }
  0x41   : > { %v374_v15 = vld [vmem:[#allocation5 + $0x220] sm:$0xff]  ;;  %849 = vmatprep.subr.bf16.mxu1 %v634_v7  ;;  %v627_v16 = vpack.c.bf16 %v372_v13, %v367_v11  ;;  %v371_v19 = vld [vmem:[#allocation5 + $0x208] sm:$0xff]  ;;  %v368_v20 = vld [vmem:[#allocation5 + $0x1f0] sm:$0xff]  ;;  %s1866_s24 = scalar_lea.vmem %s2647_s27, 7680  ;;  %s1872_s30 = scalar_lea.vmem %s1871_s29, 15360 }
  0x42   : > { %717 = vmatpush1.bf16.xpose.msra.mxu0 %v631_v8  ;;  %v629_v17 = vpack.c.bf16 %v374_v15, %v369_v14  ;;  %850 = vmatpush1.bf16.xpose.msra.mxu1 %v633_v12  ;;  %v366_v18 = vld [vmem:[#allocation5 + $0x1e0] sm:$0xff]  ;;  %v373_v21 = vld [vmem:[#allocation5 + $0x218] sm:$0xff]  ;;  %v359_v24 = vld [vmem:[#allocation5 + $0x1a8] sm:$0xff]  ;;  %p1867_p1 = scmp.ne.s32.totalorder %s2647_s27, %s1866_s24  ;;  %p1873_p2 = scmp.lt.s32.totalorder %s2647_s27, %s1871_s29 }
  0x43   : > { %718 = vmatprep.subr.bf16.mxu0 %v627_v16  ;;  %v357_v22 = vld [vmem:[#allocation5 + $0x198] sm:$0xff]  ;;  %v362_v23 = vld [vmem:[#allocation5 + $0x1c0] sm:$0xff]  ;;  %v364_v25 = vld [vmem:[#allocation5 + $0x1d0] sm:$0xff]  ;;  %v626_v26 = vpack.c.bf16 %v371_v19, %v366_v18  ;;  %v628_v27 = vpack.c.bf16 %v373_v21, %v368_v20  ;;  %p1874_p5 = scmp.lt.s32.totalorder %s1872_s30, %s1866_s24 }
  0x44   : > { %851 = vmatprep.subr.bf16.mxu1 %v629_v17  ;;  %v622_v28 = vpack.c.bf16 %v362_v23, %v357_v22  ;;  %v624_v29 = vpack.c.bf16 %v364_v25, %v359_v24  ;;  %v356_v30 = vld [vmem:[#allocation5 + $0x190] sm:$0xff]  ;;  %v361_v31 = vld [vmem:[#allocation5 + $0x1b8] sm:$0xff]  ;;  %v358_v32 = vld [vmem:[#allocation5 + $0x1a0] sm:$0xff]  ;;  %p1868_p8 = pnand %p1867_p1, %p2060_p13 }
  0x45   : > { %v363_v33 = vld [vmem:[#allocation5 + $0x1c8] sm:$0xff]  ;;  %v352_v35 = vld [vmem:[#allocation5 + $0x170] sm:$0xff]  ;;  %v349_v36 = vld [vmem:[#allocation5 + $0x158] sm:$0xff]  ;;  %v621_v38 = vpack.c.bf16 %v361_v31, %v356_v30  ;;  %p1875_p7 = por %p1874_p5, %p1873_p2 }
  0x46   : > { %v347_v34 = vld [vmem:[#allocation5 + $0x148] sm:$0xff]  ;;  %v354_v37 = vld [vmem:[#allocation5 + $0x180] sm:$0xff]  ;;  %v623_v39 = vpack.c.bf16 %v363_v33, %v358_v32  ;;  %v348_v44 = vld [vmem:[#allocation5 + $0x150] sm:$0xff]  ;;  %p1869_p11 = pneg %p1868_p8 }
  0x47   : > { %v617_v40 = vpack.c.bf16 %v352_v35, %v347_v34  ;;  %v619_v41 = vpack.c.bf16 %v354_v37, %v349_v36  ;;  %v346_v42 = vld [vmem:[#allocation5 + $0x140] sm:$0xff]  ;;  %v351_v43 = vld [vmem:[#allocation5 + $0x168] sm:$0xff]  ;;  %v353_v45 = vld [vmem:[#allocation5 + $0x178] sm:$0xff] }
  0x48   : > { %v337_v46 = vld [vmem:[#allocation5 + $0xf8] sm:$0xff]  ;;  %v342_v47 = vld [vmem:[#allocation5 + $0x120] sm:$0xff]  ;;  %v339_v48 = vld [vmem:[#allocation5 + $0x108] sm:$0xff]  ;;  %v616_v50 = vpack.c.bf16 %v351_v43, %v346_v42  ;;  %v618_v51 = vpack.c.bf16 %v353_v45, %v348_v44  ;;  %p1876_p4 = pnand %p1875_p7, %p1869_p11 }
  0x49   : > { %v344_v49 = vld [vmem:[#allocation5 + $0x130] sm:$0xff]  ;;  %v612_v52 = vpack.c.bf16 %v342_v47, %v337_v46  ;;  %v341_v55 = vld [vmem:[#allocation5 + $0x118] sm:$0xff]  ;;  %v338_v56 = vld [vmem:[#allocation5 + $0x100] sm:$0xff] }
  0x4a   : > { %719 = vmatpush1.bf16.xpose.msra.mxu0 %v626_v26  ;;  %852 = vmatpush1.bf16.xpose.msra.mxu1 %v628_v27  ;;  %v614_v53 = vpack.c.bf16 %v344_v49, %v339_v48  ;;  %v336_v54 = vld [vmem:[#allocation5 + $0xf0] sm:$0xff]  ;;  %v343_v57 = vld [vmem:[#allocation5 + $0x128] sm:$0xff]  ;;  %v329_v60 = vld [vmem:[#allocation5 + $0xb8] sm:$0xff] }
  0x4b   : > { %720 = vmatprep.subr.bf16.mxu0 %v622_v28  ;;  %853 = vmatprep.subr.bf16.mxu1 %v624_v29  ;;  %v327_v58 = vld [vmem:[#allocation5 + $0xa8] sm:$0xff]  ;;  %v332_v59 = vld [vmem:[#allocation5 + $0xd0] sm:$0xff]  ;;  %v334_v61 = vld [vmem:[#allocation5 + $0xe0] sm:$0xff]  ;;  %v611_v62 = vpack.c.bf16 %v341_v55, %v336_v54  ;;  %v613_v63 = vpack.c.bf16 %v343_v57, %v338_v56 }
  0x4c   : > { %v607_v0 = vpack.c.bf16 %v332_v59, %v327_v58  ;;  %v609_v1 = vpack.c.bf16 %v334_v61, %v329_v60  ;;  %v326_v2 = vld [vmem:[#allocation5 + $0xa0] sm:$0xff]  ;;  %v331_v3 = vld [vmem:[#allocation5 + $0xc8] sm:$0xff]  ;;  %v328_v4 = vld [vmem:[#allocation5 + $0xb0] sm:$0xff] }
  0x4d   : > { %v333_v5 = vld [vmem:[#allocation5 + $0xd8] sm:$0xff]  ;;  %v322_v7 = vld [vmem:[#allocation5 + $0x80] sm:$0xff]  ;;  %v319_v8 = vld [vmem:[#allocation5 + $0x68] sm:$0xff]  ;;  %v606_v10 = vpack.c.bf16 %v331_v3, %v326_v2 }
  0x4e   : > { %v317_v6 = vld [vmem:[#allocation5 + $0x58] sm:$0xff]  ;;  %v324_v9 = vld [vmem:[#allocation5 + $0x90] sm:$0xff]  ;;  %v608_v11 = vpack.c.bf16 %v333_v5, %v328_v4  ;;  %v207_v14 = vld [vmem:[%s2093_s18 + $0x8] sm:$0xff] }
  0x4f   : > { %v602_v12 = vpack.c.bf16 %v322_v7, %v317_v6  ;;  %v604_v13 = vpack.c.bf16 %v324_v9, %v319_v8  ;;  %v212_v15 = vld [vmem:[%s2093_s18 + $0x30] sm:$0xff]  ;;  %v209_v16 = vld [vmem:[%s2093_s18 + $0x18] sm:$0xff]  ;;  %v214_v17 = vld [vmem:[%s2093_s18 + $0x40] sm:$0xff] }
  0x50   : > { %v2107_v18 = vpack.c.bf16 %v212_v15, %v207_v14  ;;  %v2109_v19 = vpack.c.bf16 %v214_v17, %v209_v16  ;;  %v316_v20 = vld [vmem:[#allocation5 + $0x50] sm:$0xff]  ;;  %v321_v21 = vld [vmem:[#allocation5 + $0x78] sm:$0xff]  ;;  %v318_v22 = vld [vmem:[#allocation5 + $0x60] sm:$0xff] }
  0x51   : > { %v323_v23 = vld [vmem:[#allocation5 + $0x88] sm:$0xff]  ;;  %v312_v25 = vld [vmem:[#allocation5 + $0x30] sm:$0xff]  ;;  %v309_v26 = vld [vmem:[#allocation5 + $0x18] sm:$0xff]  ;;  %v601_v28 = vpack.c.bf16 %v321_v21, %v316_v20 }
  0x52   : > { %721 = vmatpush1.bf16.xpose.msra.mxu0 %v621_v38  ;;  %854 = vmatpush1.bf16.xpose.msra.mxu1 %v623_v39  ;;  %v307_v24 = vld [vmem:[#allocation5 + $0x8] sm:$0xff]  ;;  %v314_v27 = vld [vmem:[#allocation5 + $0x40] sm:$0xff]  ;;  %v603_v29 = vpack.c.bf16 %v323_v23, %v318_v22  ;;  %v308_v34 = vld [vmem:[#allocation5 + $0x10] sm:$0xff] }
  0x53   : > { %722 = vmatprep.subr.bf16.mxu0 %v617_v40  ;;  %855 = vmatprep.subr.bf16.mxu1 %v619_v41  ;;  %v597_v30 = vpack.c.bf16 %v312_v25, %v307_v24  ;;  %v599_v31 = vpack.c.bf16 %v314_v27, %v309_v26  ;;  %v306_v32 = vld [vmem:[#allocation5] sm:$0xff]  ;;  %v311_v33 = vld [vmem:[#allocation5 + $0x28] sm:$0xff]  ;;  %v313_v35 = vld [vmem:[#allocation5 + $0x38] sm:$0xff] }
  0x54   : > { %748 = vmatprep.mubr.bf16.mxu0 %v2107_v18  ;;  %881 = vmatprep.mubr.bf16.mxu1 %v2109_v19  ;;  %v457_v36 = vld [vmem:[#allocation5 + $0x4b8] sm:$0xff]  ;;  %v462_v37 = vld [vmem:[#allocation5 + $0x4e0] sm:$0xff]  ;;  %v459_v38 = vld [vmem:[#allocation5 + $0x4c8] sm:$0xff]  ;;  %v596_v40 = vpack.c.bf16 %v311_v33, %v306_v32  ;;  %v598_v41 = vpack.c.bf16 %v313_v35, %v308_v34 }
  0x55   : > { %v464_v39 = vld [vmem:[#allocation5 + $0x4f0] sm:$0xff]  ;;  %v672_v42 = vpack.c.bf16 %v462_v37, %v457_v36  ;;  %v461_v45 = vld [vmem:[#allocation5 + $0x4d8] sm:$0xff]  ;;  %v458_v46 = vld [vmem:[#allocation5 + $0x4c0] sm:$0xff] }
  0x56   : > { %v674_v43 = vpack.c.bf16 %v464_v39, %v459_v38  ;;  %v456_v44 = vld [vmem:[#allocation5 + $0x4b0] sm:$0xff]  ;;  %v463_v47 = vld [vmem:[#allocation5 + $0x4e8] sm:$0xff]  ;;  %v446_v56 = vld [vmem:[#allocation5 + $0x460] sm:$0xff] }
  0x57   : > { %v447_v48 = vld [vmem:[#allocation5 + $0x468] sm:$0xff]  ;;  %v452_v49 = vld [vmem:[#allocation5 + $0x490] sm:$0xff]  ;;  %v453_v59 = vld [vmem:[#allocation5 + $0x498] sm:$0xff] }
  0x58   : > { %v667_v54 = vpack.c.bf16 %v452_v49, %v447_v48  ;;  %v451_v57 = vld [vmem:[#allocation5 + $0x488] sm:$0xff]  ;;  %v448_v58 = vld [vmem:[#allocation5 + $0x470] sm:$0xff]  ;;  %v437_v60 = vld [vmem:[#allocation5 + $0x418] sm:$0xff] }
  0x59   : > { %v442_v61 = vld [vmem:[#allocation5 + $0x440] sm:$0xff]  ;;  %v436_v4 = vld [vmem:[#allocation5 + $0x410] sm:$0xff]  ;;  %v441_v5 = vld [vmem:[#allocation5 + $0x438] sm:$0xff] }
  0x5a   : > { %723 = vmatpush1.bf16.xpose.msra.mxu0 %v616_v50  ;;  %856 = vmatpush1.bf16.xpose.msra.mxu1 %v618_v51  ;;  %v449_v50 = vld [vmem:[#allocation5 + $0x478] sm:$0xff]  ;;  %v454_v51 = vld [vmem:[#allocation5 + $0x4a0] sm:$0xff]  ;;  %v662_v2 = vpack.c.bf16 %v442_v61, %v437_v60  ;;  %v443_v7 = vld [vmem:[#allocation5 + $0x448] sm:$0xff] }
  0x5b   : > { %724 = vmatprep.subr.bf16.mxu0 %v612_v52  ;;  %857 = vmatprep.subr.bf16.mxu1 %v614_v53  ;;  %v671_v52 = vpack.c.bf16 %v461_v45, %v456_v44  ;;  %v673_v53 = vpack.c.bf16 %v463_v47, %v458_v46  ;;  %v669_v55 = vpack.c.bf16 %v454_v51, %v449_v50  ;;  %v438_v6 = vld [vmem:[#allocation5 + $0x420] sm:$0xff]  ;;  %v427_v8 = vld [vmem:[#allocation5 + $0x3c8] sm:$0xff]  ;;  %v432_v9 = vld [vmem:[#allocation5 + $0x3f0] sm:$0xff] }
  0x5c   : > { %v657_v14 = vpack.c.bf16 %v432_v9, %v427_v8  ;;  %v426_v16 = vld [vmem:[#allocation5 + $0x3c0] sm:$0xff]  ;;  %v431_v17 = vld [vmem:[#allocation5 + $0x3e8] sm:$0xff]  ;;  %v428_v20 = vld [vmem:[#allocation5 + $0x3d0] sm:$0xff] }
  0x5d   : > { %v433_v21 = vld [vmem:[#allocation5 + $0x3f8] sm:$0xff]  ;;  %v422_v23 = vld [vmem:[#allocation5 + $0x3a0] sm:$0xff]  ;;  %v419_v24 = vld [vmem:[#allocation5 + $0x388] sm:$0xff]  ;;  %v656_v26 = vpack.c.bf16 %v431_v17, %v426_v16 }
  0x5e   : > { %v417_v22 = vld [vmem:[#allocation5 + $0x378] sm:$0xff]  ;;  %v424_v25 = vld [vmem:[#allocation5 + $0x3b0] sm:$0xff]  ;;  %v658_v27 = vpack.c.bf16 %v433_v21, %v428_v20  ;;  %v418_v32 = vld [vmem:[#allocation5 + $0x380] sm:$0xff] }
  0x5f   : > { %v423_v33 = vld [vmem:[#allocation5 + $0x3a8] sm:$0xff]  ;;  %v412_v35 = vld [vmem:[#allocation5 + $0x350] sm:$0xff]  ;;  %v409_v36 = vld [vmem:[#allocation5 + $0x338] sm:$0xff] }
  0x60   : > { %v407_v34 = vld [vmem:[#allocation5 + $0x328] sm:$0xff]  ;;  %v414_v37 = vld [vmem:[#allocation5 + $0x360] sm:$0xff]  ;;  %v653_v39 = vpack.c.bf16 %v423_v33, %v418_v32  ;;  %v408_v44 = vld [vmem:[#allocation5 + $0x330] sm:$0xff] }
  0x61   : > { %v413_v45 = vld [vmem:[#allocation5 + $0x358] sm:$0xff]  ;;  %v402_v47 = vld [vmem:[#allocation5 + $0x300] sm:$0xff]  ;;  %v399_v48 = vld [vmem:[#allocation5 + $0x2e8] sm:$0xff] }
  0x62   : > { %725 = vmatpush1.bf16.xpose.msra.mxu0 %v611_v62  ;;  %858 = vmatpush1.bf16.xpose.msra.mxu1 %v613_v63  ;;  %v439_v62 = vld [vmem:[#allocation5 + $0x428] sm:$0xff]  ;;  %v444_v63 = vld [vmem:[#allocation5 + $0x450] sm:$0xff]  ;;  %v397_v46 = vld [vmem:[#allocation5 + $0x2d8] sm:$0xff]  ;;  %v648_v51 = vpack.c.bf16 %v413_v45, %v408_v44 }
  0x63   : > { %726 = vmatprep.subr.bf16.mxu0 %v607_v0  ;;  %859 = vmatprep.subr.bf16.mxu1 %v609_v1  ;;  %v666_v0 = vpack.c.bf16 %v451_v57, %v446_v56  ;;  %v668_v1 = vpack.c.bf16 %v453_v59, %v448_v58  ;;  %v664_v3 = vpack.c.bf16 %v444_v63, %v439_v62  ;;  %v404_v49 = vld [vmem:[#allocation5 + $0x310] sm:$0xff]  ;;  %v398_v56 = vld [vmem:[#allocation5 + $0x2e0] sm:$0xff]  ;;  %v403_v57 = vld [vmem:[#allocation5 + $0x308] sm:$0xff] }
  0x64   : > { %v387_v58 = vld [vmem:[#allocation5 + $0x288] sm:$0xff]  ;;  %v392_v59 = vld [vmem:[#allocation5 + $0x2b0] sm:$0xff]  ;;  %v389_v60 = vld [vmem:[#allocation5 + $0x298] sm:$0xff]  ;;  %v643_v63 = vpack.c.bf16 %v403_v57, %v398_v56 }
  0x65   : > { %v394_v61 = vld [vmem:[#allocation5 + $0x2c0] sm:$0xff]  ;;  %v537_v8 = vld [vmem:[#allocation5 + $0x738] sm:$0xff]  ;;  %v208_v16 = vld [vmem:[%s2093_s18 + $0x10] sm:$0xff] }
  0x66   : > { %v542_v9 = vld [vmem:[#allocation5 + $0x760] sm:$0xff]  ;;  %v213_v17 = vld [vmem:[%s2093_s18 + $0x38] sm:$0xff]  ;;  %v380_v20 = vld [vmem:[#allocation5 + $0x250] sm:$0xff] }
  0x67   : > { %v385_v21 = vld [vmem:[#allocation5 + $0x278] sm:$0xff]  ;;  %v527_v33 = vld [vmem:[#allocation5 + $0x6e8] sm:$0xff]  ;;  %v370_v44 = vld [vmem:[#allocation5 + $0x200] sm:$0xff] }
  0x68   : > { %v635_v32 = vpack.c.bf16 %v385_v21, %v380_v20  ;;  %v375_v45 = vld [vmem:[#allocation5 + $0x228] sm:$0xff]  ;;  %v517_v57 = vld [vmem:[#allocation5 + $0x698] sm:$0xff]  ;;  %v512_v20 = vld [vmem:[#allocation5 + $0x670] sm:$0xff] }
  0x69   : > { %v630_v56 = vpack.c.bf16 %v375_v45, %v370_v44  ;;  %v511_v44 = vld [vmem:[#allocation5 + $0x668] sm:$0xff] }
  0x6a   : > { %727 = vmatpush1.bf16.xpose.msra.mxu0 %v606_v10  ;;  %860 = vmatpush1.bf16.xpose.msra.mxu1 %v608_v11  ;;  %v429_v10 = vld [vmem:[#allocation5 + $0x3d8] sm:$0xff]  ;;  %v434_v11 = vld [vmem:[#allocation5 + $0x400] sm:$0xff] }
  0x6b   : > { %728 = vmatprep.subr.bf16.mxu0 %v602_v12  ;;  %861 = vmatprep.subr.bf16.mxu1 %v604_v13  ;;  %v661_v12 = vpack.c.bf16 %v441_v5, %v436_v4  ;;  %v663_v13 = vpack.c.bf16 %v443_v7, %v438_v6  ;;  %v659_v15 = vpack.c.bf16 %v434_v11, %v429_v10  ;;  %v388_v4 = vld [vmem:[#allocation5 + $0x290] sm:$0xff]  ;;  %v393_v5 = vld [vmem:[#allocation5 + $0x2b8] sm:$0xff] }
  0x6c   : > { %v460_v6 = vld [vmem:[#allocation5 + $0x4d0] sm:$0xff]  ;;  %v465_v7 = vld [vmem:[#allocation5 + $0x4f8] sm:$0xff]  ;;  %v638_v11 = vpack.c.bf16 %v393_v5, %v388_v4 }
  0x6d   : > { %v360_v4 = vld [vmem:[#allocation5 + $0x1b0] sm:$0xff]  ;;  %v365_v5 = vld [vmem:[#allocation5 + $0x1d8] sm:$0xff] }
  0x72   : > { %729 = vmatpush1.bf16.xpose.msra.mxu0 %v601_v28  ;;  %862 = vmatpush1.bf16.xpose.msra.mxu1 %v603_v29  ;;  %v652_v28 = vpack.c.bf16 %v422_v23, %v417_v22  ;;  %v654_v29 = vpack.c.bf16 %v424_v25, %v419_v24  ;;  %v217_v22 = vld [vmem:[%s2093_s18 + $0x58] sm:$0xff]  ;;  %v222_v23 = vld [vmem:[%s2093_s18 + $0x80] sm:$0xff]  ;;  %v219_v24 = vld [vmem:[%s2093_s18 + $0x68] sm:$0xff] }
  0x73   : > { %730 = vmatprep.subr.bf16.mxu0 %v597_v30  ;;  %863 = vmatprep.subr.bf16.mxu1 %v599_v31  ;;  %v416_v30 = vld [vmem:[#allocation5 + $0x370] sm:$0xff]  ;;  %v421_v31 = vld [vmem:[#allocation5 + $0x398] sm:$0xff] }
  0x74   : > { %v651_v38 = vpack.c.bf16 %v421_v31, %v416_v30  ;;  %v224_v25 = vld [vmem:[%s2093_s18 + $0x90] sm:$0xff]  ;;  %v541_v30 = vld [vmem:[#allocation5 + $0x758] sm:$0xff]  ;;  %v2123_v31 = vpack.c.bf16 %v213_v17, %v208_v16  ;;  %v625_v16 = vpack.c.bf16 %v365_v5, %v360_v4  ;;  %v507_v17 = vld [vmem:[#allocation5 + $0x648] sm:$0xff] }
  0x75   : > { %v496_v4 = vld [vmem:[#allocation5 + $0x5f0] sm:$0xff] }
  0x7a   : > { %731 = vmatpush1.bf16.xpose.msra.mxu0 %v596_v40  ;;  %864 = vmatpush1.bf16.xpose.msra.mxu1 %v598_v41  ;;  %v647_v40 = vpack.c.bf16 %v412_v35, %v407_v34  ;;  %v649_v41 = vpack.c.bf16 %v414_v37, %v409_v36  ;;  %v532_v34 = vld [vmem:[#allocation5 + $0x710] sm:$0xff]  ;;  %v2125_v35 = vpack.c.bf16 %v222_v23, %v217_v22 }
  0x7b   : > { %732 = vmatprep.subr.bf16.mxu0 %v672_v42  ;;  %865 = vmatprep.subr.bf16.mxu1 %v674_v43  ;;  %v406_v42 = vld [vmem:[#allocation5 + $0x320] sm:$0xff]  ;;  %v411_v43 = vld [vmem:[#allocation5 + $0x348] sm:$0xff]  ;;  %v2127_v36 = vpack.c.bf16 %v224_v25, %v219_v24  ;;  %v236_v25 = vld [vmem:[%s2093_s18 + $0xf0] sm:$0xff] }
  0x7c   : > { %v646_v50 = vpack.c.bf16 %v411_v43, %v406_v42  ;;  %v218_v42 = vld [vmem:[%s2093_s18 + $0x60] sm:$0xff]  ;;  %v223_v43 = vld [vmem:[%s2093_s18 + $0x88] sm:$0xff] }
  0x82   : > { %733 = vmatpush2.bf16.xpose.msra.mxu0 %v671_v52  ;;  %866 = vmatpush2.bf16.xpose.msra.mxu1 %v673_v53  ;;  %v642_v52 = vpack.c.bf16 %v402_v47, %v397_v46  ;;  %v644_v53 = vpack.c.bf16 %v404_v49, %v399_v48  ;;  %v227_v46 = vld [vmem:[%s2093_s18 + $0xa8] sm:$0xff]  ;;  %v232_v47 = vld [vmem:[%s2093_s18 + $0xd0] sm:$0xff]  ;;  %v229_v48 = vld [vmem:[%s2093_s18 + $0xb8] sm:$0xff] }
  0x83   : > { %734 = vmatprep.subr.bf16.mxu0 %v667_v54  ;;  %867 = vmatprep.subr.bf16.mxu1 %v669_v55  ;;  %v396_v54 = vld [vmem:[#allocation5 + $0x2d0] sm:$0xff]  ;;  %v401_v55 = vld [vmem:[#allocation5 + $0x2f8] sm:$0xff]  ;;  %v234_v49 = vld [vmem:[%s2093_s18 + $0xe0] sm:$0xff] }
  0x84   : > { %v641_v62 = vpack.c.bf16 %v401_v55, %v396_v54  ;;  %v531_v54 = vld [vmem:[#allocation5 + $0x708] sm:$0xff]  ;;  %v2143_v55 = vpack.c.bf16 %v223_v43, %v218_v42  ;;  %v425_v42 = vld [vmem:[#allocation5 + $0x3b8] sm:$0xff]  ;;  %v506_v43 = vld [vmem:[#allocation5 + $0x640] sm:$0xff] }
  0x8a   : > { %735 = vmatpush2.bf16.xpose.msra.mxu0 %v666_v0  ;;  %868 = vmatpush2.bf16.xpose.msra.mxu1 %v668_v1  ;;  %v637_v0 = vpack.c.bf16 %v392_v59, %v387_v58  ;;  %v639_v1 = vpack.c.bf16 %v394_v61, %v389_v60  ;;  %v522_v58 = vld [vmem:[#allocation5 + $0x6c0] sm:$0xff]  ;;  %v2145_v59 = vpack.c.bf16 %v232_v47, %v227_v46  ;;  %v497_v47 = vld [vmem:[#allocation5 + $0x5f8] sm:$0xff] }
  0x8b   : > { %736 = vmatprep.subr.bf16.mxu0 %v662_v2  ;;  %869 = vmatprep.subr.bf16.mxu1 %v664_v3  ;;  %v386_v2 = vld [vmem:[#allocation5 + $0x280] sm:$0xff]  ;;  %v391_v3 = vld [vmem:[#allocation5 + $0x2a8] sm:$0xff]  ;;  %v2147_v60 = vpack.c.bf16 %v234_v49, %v229_v48 }
  0x8c   : > { %v636_v10 = vpack.c.bf16 %v391_v3, %v386_v2  ;;  %v228_v2 = vld [vmem:[%s2093_s18 + $0xb0] sm:$0xff]  ;;  %v233_v3 = vld [vmem:[%s2093_s18 + $0xd8] sm:$0xff]  ;;  %v502_v48 = vld [vmem:[#allocation5 + $0x620] sm:$0xff] }
  0x92   : > { %737 = vmatpush2.bf16.xpose.msra.mxu0 %v661_v12  ;;  %870 = vmatpush2.bf16.xpose.msra.mxu1 %v663_v13  ;;  %v675_v12 = vpack.c.bf16 %v465_v7, %v460_v6  ;;  %v712_v13 = vpack.c.bf16 %v542_v9, %v537_v8  ;;  %v237_v6 = vld [vmem:[%s2093_s18 + $0xf8] sm:$0xff]  ;;  %v242_v7 = vld [vmem:[%s2093_s18 + $0x120] sm:$0xff]  ;;  %v239_v8 = vld [vmem:[%s2093_s18 + $0x108] sm:$0xff] }
  0x93   : > { %738 = vmatprep.subr.bf16.mxu0 %v657_v14  ;;  %871 = vmatprep.subr.bf16.mxu1 %v659_v15  ;;  %v206_v14 = vld [vmem:[%s2093_s18] sm:$0xff]  ;;  %v211_v15 = vld [vmem:[%s2093_s18 + $0x28] sm:$0xff]  ;;  %v244_v9 = vld [vmem:[%s2093_s18 + $0x130] sm:$0xff]  ;;  %v2165_v21 = vpack.c.bf16 %v242_v7, %v237_v6 }
  0x94   : > { %v2167_v22 = vpack.c.bf16 %v244_v9, %v239_v8  ;;  %v501_v6 = vld [vmem:[#allocation5 + $0x618] sm:$0xff]  ;;  %v410_v7 = vld [vmem:[#allocation5 + $0x340] sm:$0xff]  ;;  %v415_v8 = vld [vmem:[#allocation5 + $0x368] sm:$0xff] }
  0x9a   : > { %739 = vmatpush2.bf16.xpose.msra.mxu0 %v656_v26  ;;  %872 = vmatpush2.bf16.xpose.msra.mxu1 %v658_v27  ;;  %v450_v26 = vld [vmem:[#allocation5 + $0x480] sm:$0xff]  ;;  %v2121_v27 = vpack.c.bf16 %v211_v15, %v206_v14  ;;  %v521_v14 = vld [vmem:[#allocation5 + $0x6b8] sm:$0xff]  ;;  %v2163_v15 = vpack.c.bf16 %v233_v3, %v228_v2  ;;  %v340_v2 = vld [vmem:[#allocation5 + $0x110] sm:$0xff] }
  0x9b   : > { %740 = vmatprep.subr.bf16.mxu0 %v652_v28  ;;  %873 = vmatprep.subr.bf16.mxu1 %v654_v29  ;;  %v455_v28 = vld [vmem:[#allocation5 + $0x4a8] sm:$0xff]  ;;  %v536_v29 = vld [vmem:[#allocation5 + $0x730] sm:$0xff]  ;;  %v345_v3 = vld [vmem:[#allocation5 + $0x138] sm:$0xff] }
  0x9c   : > { %v670_v37 = vpack.c.bf16 %v455_v28, %v450_v26  ;;  %v241_v26 = vld [vmem:[%s2093_s18 + $0x118] sm:$0xff]  ;;  %v697_v28 = vpack.c.bf16 %v512_v20, %v507_v17  ;;  %v691_v17 = vpack.c.bf16 %v501_v6, %v496_v4  ;;  %v650_v20 = vpack.c.bf16 %v415_v8, %v410_v7  ;;  %v320_v4 = vld [vmem:[#allocation5 + $0x70] sm:$0xff] }
  0x9d   : > { %v325_v6 = vld [vmem:[#allocation5 + $0x98] sm:$0xff]  ;;  %v476_v7 = vld [vmem:[#allocation5 + $0x550] sm:$0xff] }
  0xa2   : > { %741 = vmatpush2.bf16.xpose.msra.mxu0 %v651_v38  ;;  %874 = vmatpush2.bf16.xpose.msra.mxu1 %v653_v39  ;;  %v711_v38 = vpack.c.bf16 %v541_v30, %v536_v29  ;;  %v216_v39 = vld [vmem:[%s2093_s18 + $0x50] sm:$0xff]  ;;  %v238_v29 = vld [vmem:[%s2093_s18 + $0x100] sm:$0xff]  ;;  %v243_v30 = vld [vmem:[%s2093_s18 + $0x128] sm:$0xff] }
  0xa3   : > { %742 = vmatprep.subr.bf16.mxu0 %v647_v40  ;;  %875 = vmatprep.subr.bf16.mxu1 %v649_v41  ;;  %v221_v40 = vld [vmem:[%s2093_s18 + $0x78] sm:$0xff]  ;;  %v707_v41 = vpack.c.bf16 %v532_v34, %v527_v33  ;;  %v252_v33 = vld [vmem:[%s2093_s18 + $0x170] sm:$0xff]  ;;  %v2183_v45 = vpack.c.bf16 %v243_v30, %v238_v29  ;;  %v267_v29 = vld [vmem:[%s2093_s18 + $0x1e8] sm:$0xff] }
  0xa4   : > { %v249_v34 = vld [vmem:[%s2093_s18 + $0x158] sm:$0xff]  ;;  %v272_v30 = vld [vmem:[%s2093_s18 + $0x210] sm:$0xff] }
  0xaa   : > { %743 = vmatpush2.bf16.xpose.msra.mxu0 %v646_v50  ;;  %876 = vmatpush2.bf16.xpose.msra.mxu1 %v648_v51  ;;  %v440_v50 = vld [vmem:[#allocation5 + $0x430] sm:$0xff]  ;;  %v2141_v51 = vpack.c.bf16 %v221_v40, %v216_v39  ;;  %v355_v39 = vld [vmem:[#allocation5 + $0x188] sm:$0xff] }
  0xab   : > { %744 = vmatprep.subr.bf16.mxu0 %v642_v52  ;;  %877 = vmatprep.subr.bf16.mxu1 %v644_v53  ;;  %v445_v52 = vld [vmem:[#allocation5 + $0x458] sm:$0xff]  ;;  %v526_v53 = vld [vmem:[#allocation5 + $0x6e0] sm:$0xff]  ;;  %v420_v40 = vld [vmem:[#allocation5 + $0x390] sm:$0xff] }
  0xac   : > { %v665_v61 = vpack.c.bf16 %v445_v52, %v440_v50  ;;  %v655_v52 = vpack.c.bf16 %v425_v42, %v420_v40  ;;  %v491_v40 = vld [vmem:[#allocation5 + $0x5c8] sm:$0xff]  ;;  %v400_v42 = vld [vmem:[#allocation5 + $0x2f0] sm:$0xff] }
  0xb2   : > { %745 = vmatpush2.bf16.xpose.msra.mxu0 %v641_v62  ;;  %878 = vmatpush2.bf16.xpose.msra.mxu1 %v643_v63  ;;  %v706_v62 = vpack.c.bf16 %v531_v54, %v526_v53  ;;  %v226_v63 = vld [vmem:[%s2093_s18 + $0xa0] sm:$0xff]  ;;  %v696_v53 = vpack.c.bf16 %v511_v44, %v506_v43  ;;  %v405_v43 = vld [vmem:[#allocation5 + $0x318] sm:$0xff] }
  0xb3   : > { %746 = vmatprep.subr.bf16.mxu0 %v637_v0  ;;  %879 = vmatprep.subr.bf16.mxu1 %v639_v1  ;;  %v231_v0 = vld [vmem:[%s2093_s18 + $0xc8] sm:$0xff]  ;;  %v702_v1 = vpack.c.bf16 %v522_v58, %v517_v57  ;;  %v246_v54 = vld [vmem:[%s2093_s18 + $0x140] sm:$0xff]  ;;  %v692_v57 = vpack.c.bf16 %v502_v48, %v497_v47  ;;  %v248_v58 = vld [vmem:[%s2093_s18 + $0x150] sm:$0xff]  ;;  %v2225_v47 = vpack.c.bf16 %v272_v30, %v267_v29 }
  0xb4   : > { %v477_v48 = vld [vmem:[#allocation5 + $0x558] sm:$0xff]  ;;  %v276_v30 = vld [vmem:[%s2093_s18 + $0x230] sm:$0xff] }
  0xba   : > { %747 = vmatpush2.bf16.xpose.msra.mxu0 %v636_v10  ;;  %880 = vmatpush2.bf16.xpose.msra.mxu1 %v638_v11  ;;  %v430_v10 = vld [vmem:[#allocation5 + $0x3e0] sm:$0xff]  ;;  %v2161_v11 = vpack.c.bf16 %v231_v0, %v226_v63  ;;  %v259_v0 = vld [vmem:[%s2093_s18 + $0x1a8] sm:$0xff] }
  0xbb   : > { %1638 = vmatprep.subr.bf16.mxu0 %v675_v12  ;;  %1115 = vmatprep.subr.bf16.mxu1 %v712_v13  ;;  %v435_v12 = vld [vmem:[#allocation5 + $0x408] sm:$0xff]  ;;  %v516_v13 = vld [vmem:[#allocation5 + $0x690] sm:$0xff]  ;;  %v262_v63 = vld [vmem:[%s2093_s18 + $0x1c0] sm:$0xff] }
  0xbc   : > { %v660_v23 = vpack.c.bf16 %v435_v12, %v430_v10  ;;  %v701_v24 = vpack.c.bf16 %v521_v14, %v516_v13  ;;  %v487_v12 = vld [vmem:[#allocation5 + $0x5a8] sm:$0xff]  ;;  %v492_v13 = vld [vmem:[#allocation5 + $0x5d0] sm:$0xff] }
  0xc1   : > { %749 = vmatmul.mubr.bf16.vlgmr.msra.gmra.mxu0 %v2121_v27  ;;  %882 = vmatmul.mubr.bf16.vlgmr.msra.gmra.mxu1 %v2123_v31 }
  0xc2   : > { %1639 = vmatpush3.bf16.xpose.msra.mxu0 %v635_v32  ;;  %758 = vmatprep.mubr.bf16.mxu0 %v2125_v35  ;;  %v247_v32 = vld [vmem:[%s2093_s18 + $0x148] sm:$0xff] }
  0xc3   : > { %891 = vmatprep.mubr.bf16.mxu1 %v2127_v36  ;;  %1640 = vmatprep.subr.bf16.mxu0 %v670_v37  ;;  %v254_v37 = vld [vmem:[%s2093_s18 + $0x180] sm:$0xff]  ;;  %v2185_v46 = vpack.c.bf16 %v252_v33, %v247_v32  ;;  %v269_v32 = vld [vmem:[%s2093_s18 + $0x1f8] sm:$0xff] }
  0xc4   : > { %1116 = vmatpush1.bf16.xpose.msra.mxu1 %v711_v38  ;;  %v350_v38 = vld [vmem:[#allocation5 + $0x160] sm:$0xff]  ;;  %v2187_v49 = vpack.c.bf16 %v254_v37, %v249_v34  ;;  %v335_v37 = vld [vmem:[#allocation5 + $0xe8] sm:$0xff] }
  0xc5   : > { %1117 = vmatprep.subr.bf16.mxu1 %v707_v41  ;;  %v2181_v41 = vpack.c.bf16 %v241_v26, %v236_v25  ;;  %v620_v50 = vpack.c.bf16 %v355_v39, %v350_v38  ;;  %v687_v25 = vpack.c.bf16 %v492_v13, %v487_v12  ;;  %v258_v26 = vld [vmem:[%s2093_s18 + $0x1a0] sm:$0xff]  ;;  %v481_v12 = vld [vmem:[#allocation5 + $0x578] sm:$0xff] }
  0xc6   : > { %v274_v33 = vld [vmem:[%s2093_s18 + $0x220] sm:$0xff] }
  0xc7   : > { %v330_v34 = vld [vmem:[#allocation5 + $0xc0] sm:$0xff] }
  0xc8   : > { %v486_v38 = vld [vmem:[#allocation5 + $0x5a0] sm:$0xff] }
  0xc9   : > { %759 = vmatmul.mubr.bf16.gmra.mxu0 %v2141_v51  ;;  %892 = vmatmul.mubr.bf16.gmra.mxu1 %v2143_v55  ;;  %v390_v13 = vld [vmem:[#allocation5 + $0x2a0] sm:$0xff] }
  0xca   : > { %1641 = vmatpush3.bf16.xpose.msra.mxu0 %v630_v56  ;;  %768 = vmatprep.mubr.bf16.mxu0 %v2145_v59  ;;  %v251_v56 = vld [vmem:[%s2093_s18 + $0x168] sm:$0xff] }
  0xcb   : > { %901 = vmatprep.mubr.bf16.mxu1 %v2147_v60  ;;  %1642 = vmatprep.subr.bf16.mxu0 %v665_v61  ;;  %v253_v61 = vld [vmem:[%s2093_s18 + $0x178] sm:$0xff]  ;;  %v2201_v5 = vpack.c.bf16 %v251_v56, %v246_v54  ;;  %v686_v54 = vpack.c.bf16 %v491_v40, %v486_v38  ;;  %v645_v56 = vpack.c.bf16 %v405_v43, %v400_v42  ;;  %v287_v38 = vld [vmem:[%s2093_s18 + $0x288] sm:$0xff]  ;;  %v292_v40 = vld [vmem:[%s2093_s18 + $0x2b0] sm:$0xff] }
  0xcc   : > { %1118 = vmatpush1.bf16.xpose.msra.mxu1 %v706_v62  ;;  %v257_v62 = vld [vmem:[%s2093_s18 + $0x198] sm:$0xff]  ;;  %v2203_v9 = vpack.c.bf16 %v253_v61, %v248_v58  ;;  %v271_v58 = vld [vmem:[%s2093_s18 + $0x208] sm:$0xff]  ;;  %v294_v43 = vld [vmem:[%s2093_s18 + $0x2c0] sm:$0xff] }
  0xcd   : > { %1119 = vmatprep.subr.bf16.mxu1 %v702_v1  ;;  %v264_v1 = vld [vmem:[%s2093_s18 + $0x1d0] sm:$0xff]  ;;  %v2205_v10 = vpack.c.bf16 %v262_v63, %v257_v62  ;;  %v273_v63 = vld [vmem:[%s2093_s18 + $0x218] sm:$0xff] }
  0xce   : > { %v2207_v14 = vpack.c.bf16 %v264_v1, %v259_v0  ;;  %v268_v62 = vld [vmem:[%s2093_s18 + $0x1f0] sm:$0xff]  ;;  %v277_v0 = vld [vmem:[%s2093_s18 + $0x238] sm:$0xff]  ;;  %v282_v1 = vld [vmem:[%s2093_s18 + $0x260] sm:$0xff] }
  0xcf   : > { %v289_v42 = vld [vmem:[%s2093_s18 + $0x298] sm:$0xff] }
  0xd1   : > { %769 = vmatmul.mubr.bf16.gmra.mxu0 %v2161_v11  ;;  %902 = vmatmul.mubr.bf16.gmra.mxu1 %v2163_v15 }
  0xd2   : > { %1643 = vmatpush3.bf16.xpose.msra.mxu0 %v625_v16  ;;  %778 = vmatprep.mubr.bf16.mxu0 %v2165_v21  ;;  %v615_v16 = vpack.c.bf16 %v345_v3, %v340_v2  ;;  %v279_v2 = vld [vmem:[%s2093_s18 + $0x248] sm:$0xff]  ;;  %v284_v3 = vld [vmem:[%s2093_s18 + $0x270] sm:$0xff] }
  0xd3   : > { %911 = vmatprep.mubr.bf16.mxu1 %v2167_v22  ;;  %1644 = vmatprep.subr.bf16.mxu0 %v660_v23  ;;  %v256_v23 = vld [vmem:[%s2093_s18 + $0x190] sm:$0xff] }
  0xd4   : > { %1120 = vmatpush1.bf16.xpose.msra.mxu1 %v701_v24  ;;  %v261_v24 = vld [vmem:[%s2093_s18 + $0x1b8] sm:$0xff] }
  0xd5   : > { %1121 = vmatprep.subr.bf16.mxu1 %v697_v28  ;;  %v263_v28 = vld [vmem:[%s2093_s18 + $0x1c8] sm:$0xff]  ;;  %v2221_v39 = vpack.c.bf16 %v261_v24, %v256_v23  ;;  %v472_v24 = vld [vmem:[#allocation5 + $0x530] sm:$0xff] }
  0xd6   : > { %v2223_v44 = vpack.c.bf16 %v263_v28, %v258_v26  ;;  %v467_v23 = vld [vmem:[#allocation5 + $0x508] sm:$0xff]  ;;  %v605_v26 = vpack.c.bf16 %v325_v6, %v320_v4  ;;  %v681_v28 = vpack.c.bf16 %v481_v12, %v476_v7  ;;  %v286_v7 = vld [vmem:[%s2093_s18 + $0x280] sm:$0xff] }
  0xd7   : > { %v291_v12 = vld [vmem:[%s2093_s18 + $0x2a8] sm:$0xff] }
  0xd9   : > { %779 = vmatmul.mubr.bf16.gmra.mxu0 %v2181_v41  ;;  %912 = vmatmul.mubr.bf16.gmra.mxu1 %v2183_v45 }
  0xda   : > { %788 = vmatprep.mubr.bf16.mxu0 %v2185_v46  ;;  %921 = vmatprep.mubr.bf16.mxu1 %v2187_v49 }
  0xdb   : > { %1645 = vmatpush3.bf16.xpose.msra.mxu0 %v620_v50  ;;  %v482_v50 = vld [vmem:[#allocation5 + $0x580] sm:$0xff] }
  0xdc   : > { %1646 = vmatprep.subr.bf16.mxu0 %v655_v52  ;;  %1122 = vmatpush1.bf16.xpose.msra.mxu1 %v696_v53  ;;  %v2227_v52 = vpack.c.bf16 %v274_v33, %v269_v32  ;;  %v610_v53 = vpack.c.bf16 %v335_v37, %v330_v34  ;;  %v682_v61 = vpack.c.bf16 %v482_v50, %v477_v48  ;;  %v281_v32 = vld [vmem:[%s2093_s18 + $0x258] sm:$0xff]  ;;  %v278_v34 = vld [vmem:[%s2093_s18 + $0x240] sm:$0xff]  ;;  %v283_v37 = vld [vmem:[%s2093_s18 + $0x268] sm:$0xff] }
  0xdd   : > { %1123 = vmatprep.subr.bf16.mxu1 %v692_v57  ;;  %v266_v57 = vld [vmem:[%s2093_s18 + $0x1e0] sm:$0xff]  ;;  %v677_v33 = vpack.c.bf16 %v472_v24, %v467_v23  ;;  %v315_v50 = vld [vmem:[#allocation5 + $0x48] sm:$0xff]  ;;  %v297_v23 = vld [vmem:[%s2093_s18 + $0x2d8] sm:$0xff] }
  0xde   : > { %v2241_v8 = vpack.c.bf16 %v271_v58, %v266_v57  ;;  %v310_v48 = vld [vmem:[#allocation5 + $0x20] sm:$0xff]  ;;  %v539_v57 = vld [vmem:[#allocation5 + $0x748] sm:$0xff]  ;;  %v544_v58 = vld [vmem:[#allocation5 + $0x770] sm:$0xff] }
  0xdf   : > { %v714_v4 = vpack.c.bf16 %v544_v58, %v539_v57  ;;  %v302_v24 = vld [vmem:[%s2093_s18 + $0x300] sm:$0xff]  ;;  %v543_v57 = vld [vmem:[#allocation5 + $0x768] sm:$0xff]  ;;  %v220_v58 = vld [vmem:[%s2093_s18 + $0x70] sm:$0xff] }
  0xe1   : > { %789 = vmatmul.mubr.bf16.gmra.mxu0 %v2201_v5  ;;  %922 = vmatmul.mubr.bf16.gmra.mxu1 %v2203_v9 }
  0xe2   : > { %798 = vmatprep.mubr.bf16.mxu0 %v2205_v10  ;;  %931 = vmatprep.mubr.bf16.mxu1 %v2207_v14 }
  0xe3   : > { %1647 = vmatpush3.bf16.xpose.msra.mxu0 %v615_v16  ;;  %v395_v16 = vld [vmem:[#allocation5 + $0x2c8] sm:$0xff] }
  0xe4   : > { %1124 = vmatpush1.bf16.xpose.msra.mxu1 %v691_v17  ;;  %1648 = vmatprep.subr.bf16.mxu0 %v650_v20  ;;  %v2243_v17 = vpack.c.bf16 %v273_v63, %v268_v62  ;;  %v2245_v20 = vpack.c.bf16 %v282_v1, %v277_v0  ;;  %v640_v29 = vpack.c.bf16 %v395_v16, %v390_v13  ;;  %v540_v63 = vld [vmem:[#allocation5 + $0x750] sm:$0xff]  ;;  %v545_v0 = vld [vmem:[#allocation5 + $0x778] sm:$0xff] }
  0xe5   : > { %1125 = vmatprep.subr.bf16.mxu1 %v687_v25  ;;  %v2247_v25 = vpack.c.bf16 %v284_v3, %v279_v2  ;;  %v2265_v62 = vpack.c.bf16 %v292_v40, %v287_v38  ;;  %v2267_v1 = vpack.c.bf16 %v294_v43, %v289_v42  ;;  %v600_v2 = vpack.c.bf16 %v315_v50, %v310_v48  ;;  %v288_v13 = vld [vmem:[%s2093_s18 + $0x290] sm:$0xff]  ;;  %v293_v16 = vld [vmem:[%s2093_s18 + $0x2b8] sm:$0xff]  ;;  %v298_v38 = vld [vmem:[%s2093_s18 + $0x2e0] sm:$0xff] }
  0xe6   : > { %v715_v6 = vpack.c.bf16 %v545_v0, %v540_v63  ;;  %v303_v40 = vld [vmem:[%s2093_s18 + $0x308] sm:$0xff]  ;;  %v210_v42 = vld [vmem:[%s2093_s18 + $0x20] sm:$0xff]  ;;  %v225_v63 = vld [vmem:[%s2093_s18 + $0x98] sm:$0xff] }
  0xe7   : > { %v215_v43 = vld [vmem:[%s2093_s18 + $0x48] sm:$0xff]  ;;  %v2301_v50 = vpack.c.bf16 %v303_v40, %v298_v38  ;;  %v529_v0 = vld [vmem:[#allocation5 + $0x6f8] sm:$0xff]  ;;  %v520_v38 = vld [vmem:[#allocation5 + $0x6b0] sm:$0xff] }
  0xe8   : > { %v525_v40 = vld [vmem:[#allocation5 + $0x6d8] sm:$0xff] }
  0xe9   : > { %799 = vmatmul.mubr.bf16.gmra.mxu0 %v2221_v39  ;;  %932 = vmatmul.mubr.bf16.gmra.mxu1 %v2223_v44 }
  0xea   : > { %808 = vmatprep.mubr.bf16.mxu0 %v2225_v47  ;;  %941 = vmatprep.mubr.bf16.mxu1 %v2227_v52 }
  0xeb   : > { %1649 = vmatpush3.bf16.xpose.msra.mxu0 %v610_v53  ;;  %v466_v53 = vld [vmem:[#allocation5 + $0x500] sm:$0xff] }
  0xec   : > { %1126 = vmatpush1.bf16.xpose.msra.mxu1 %v686_v54  ;;  %1650 = vmatprep.subr.bf16.mxu0 %v645_v56  ;;  %v2261_v54 = vpack.c.bf16 %v281_v32, %v276_v30  ;;  %v471_v56 = vld [vmem:[#allocation5 + $0x528] sm:$0xff]  ;;  %v2283_v30 = vpack.c.bf16 %v293_v16, %v288_v13  ;;  %v2285_v32 = vpack.c.bf16 %v302_v24, %v297_v23  ;;  %v533_v23 = vld [vmem:[#allocation5 + $0x718] sm:$0xff]  ;;  %v230_v24 = vld [vmem:[%s2093_s18 + $0xc0] sm:$0xff] }
  0xed   : > { %1127 = vmatprep.subr.bf16.mxu1 %v682_v61  ;;  %v2263_v61 = vpack.c.bf16 %v283_v37, %v278_v34  ;;  %v676_v3 = vpack.c.bf16 %v471_v56, %v466_v53  ;;  %v296_v34 = vld [vmem:[%s2093_s18 + $0x2d0] sm:$0xff]  ;;  %v301_v37 = vld [vmem:[%s2093_s18 + $0x2f8] sm:$0xff]  ;;  %v2303_v53 = vpack.c.bf16 %v215_v43, %v210_v42  ;;  %v538_v56 = vld [vmem:[#allocation5 + $0x740] sm:$0xff] }
  0xee   : > { %v2299_v48 = vpack.c.bf16 %v301_v37, %v296_v34  ;;  %v524_v34 = vld [vmem:[#allocation5 + $0x6d0] sm:$0xff]  ;;  %v523_v43 = vld [vmem:[#allocation5 + $0x6c8] sm:$0xff] }
  0xf1   : > { %809 = vmatmul.mubr.bf16.gmra.mxu0 %v2241_v8  ;;  %942 = vmatmul.mubr.bf16.gmra.mxu1 %v2243_v17 }
  0xf2   : > { %818 = vmatprep.mubr.bf16.mxu0 %v2245_v20  ;;  %951 = vmatprep.mubr.bf16.mxu1 %v2247_v25 }
  0xf3   : > { %1651 = vmatpush3.bf16.xpose.msra.mxu0 %v605_v26  ;;  %v299_v26 = vld [vmem:[%s2093_s18 + $0x2e8] sm:$0xff] }
  0xf4   : > { %1128 = vmatpush1.bf16.xpose.msra.mxu1 %v681_v28  ;;  %1652 = vmatprep.subr.bf16.mxu0 %v640_v29  ;;  %v304_v28 = vld [vmem:[%s2093_s18 + $0x310] sm:$0xff]  ;;  %v2281_v29 = vpack.c.bf16 %v291_v12, %v286_v7  ;;  %v535_v7 = vld [vmem:[#allocation5 + $0x728] sm:$0xff]  ;;  %v2311_v12 = vpack.c.bf16 %v225_v63, %v220_v58  ;;  %v509_v58 = vld [vmem:[#allocation5 + $0x658] sm:$0xff] }
  0xf5   : > { %1129 = vmatprep.subr.bf16.mxu1 %v677_v33  ;;  %v2287_v33 = vpack.c.bf16 %v304_v28, %v299_v26  ;;  %v235_v26 = vld [vmem:[%s2093_s18 + $0xe8] sm:$0xff]  ;;  %v514_v63 = vld [vmem:[#allocation5 + $0x680] sm:$0xff] }
  0xf6   : > { %v519_v28 = vld [vmem:[#allocation5 + $0x6a8] sm:$0xff] }
  0xf7   : > { %v704_v42 = vpack.c.bf16 %v524_v34, %v519_v28  ;;  %v500_v28 = vld [vmem:[#allocation5 + $0x610] sm:$0xff] }
  0xf9   : > { %819 = vmatmul.mubr.bf16.gmra.mxu0 %v2261_v54  ;;  %952 = vmatmul.mubr.bf16.gmra.mxu1 %v2263_v61 }
  0xfa   : > { %828 = vmatprep.mubr.bf16.mxu0 %v2265_v62  ;;  %961 = vmatprep.mubr.bf16.mxu1 %v2267_v1 }
  0xfb   : > { %1653 = vmatpush3.bf16.xpose.msra.mxu0 %v600_v2  ;;  %v534_v2 = vld [vmem:[#allocation5 + $0x720] sm:$0xff] }
  0xfc   : > { %1130 = vmatpush1.bf16.xpose.msra.mxu1 %v676_v3  ;;  %1228 = vmatprep.subr.bf16.mxu0 %v714_v4  ;;  %v713_v3 = vpack.c.bf16 %v543_v57, %v538_v56  ;;  %v530_v4 = vld [vmem:[#allocation5 + $0x700] sm:$0xff]  ;;  %v709_v13 = vpack.c.bf16 %v534_v2, %v529_v0  ;;  %v240_v56 = vld [vmem:[%s2093_s18 + $0x110] sm:$0xff]  ;;  %v245_v57 = vld [vmem:[%s2093_s18 + $0x138] sm:$0xff] }
  0xfd   : > { %1692 = vmatprep.subr.bf16.mxu1 %v715_v6  ;;  %v710_v16 = vpack.c.bf16 %v535_v7, %v530_v4  ;;  %v510_v2 = vld [vmem:[#allocation5 + $0x660] sm:$0xff]  ;;  %v699_v4 = vpack.c.bf16 %v514_v63, %v509_v58 }
  0xfe   : > { %v250_v7 = vld [vmem:[%s2093_s18 + $0x160] sm:$0xff] }
 0x101   : > { %829 = vmatmul.mubr.bf16.gmra.mxu0 %v2281_v29  ;;  %962 = vmatmul.mubr.bf16.gmra.mxu1 %v2283_v30 }
 0x102   : > { %838 = vmatprep.mubr.bf16.mxu0 %v2285_v32  ;;  %971 = vmatprep.mubr.bf16.mxu1 %v2287_v33 }
 0x109   : > { %839 = vmatmul.mubr.bf16.gmra.mxu0 %v2299_v48  ;;  %972 = vmatmul.mubr.bf16.gmra.mxu1 %v2301_v50 }
 0x10a   : > { %1654 = vmatprep.mubr.bf16.mxu0 %v2303_v53  ;;  %1147 = vmatprep.mubr.bf16.mxu1 %v2107_v18  ;;  %v528_v18 = vld [vmem:[#allocation5 + $0x6f0] sm:$0xff] }
 0x10b   : > { %v708_v37 = vpack.c.bf16 %v533_v23, %v528_v18  ;;  %v513_v18 = vld [vmem:[#allocation5 + $0x678] sm:$0xff]  ;;  %v499_v23 = vld [vmem:[#allocation5 + $0x608] sm:$0xff] }
 0x111   : > { %1655 = vmatmul.mubr.bf16.vlgmr.msra.gmra.mxu0 %v2303_v53  ;;  %1148 = vmatmul.mubr.bf16.vlgmr.msra.gmra.mxu1 %v2121_v27  ;;  %v2319_v27 = vpack.c.bf16 %v235_v26, %v230_v24  ;;  %v504_v24 = vld [vmem:[#allocation5 + $0x630] sm:$0xff] }
 0x112   : > { %1229 = vmatpush1.bf16.xpose.msra.mxu0 %v713_v3  ;;  %1656 = vmatprep.mubr.bf16.mxu0 %v2311_v12  ;;  %v515_v3 = vld [vmem:[#allocation5 + $0x688] sm:$0xff] }
 0x113   : > { %1155 = vmatprep.mubr.bf16.mxu1 %v2125_v35  ;;  %1230 = vmatprep.subr.bf16.mxu0 %v709_v13  ;;  %v705_v35 = vpack.c.bf16 %v525_v40, %v520_v38  ;;  %v255_v13 = vld [vmem:[%s2093_s18 + $0x188] sm:$0xff]  ;;  %v260_v38 = vld [vmem:[%s2093_s18 + $0x1b0] sm:$0xff]  ;;  %v265_v40 = vld [vmem:[%s2093_s18 + $0x1d8] sm:$0xff] }
 0x114   : > { %1693 = vmatpush3.bf16.xpose.msra.mxu1 %v715_v6  ;;  %v518_v6 = vld [vmem:[#allocation5 + $0x6a0] sm:$0xff]  ;;  %v2335_v26 = vpack.c.bf16 %v255_v13, %v250_v7  ;;  %v484_v7 = vld [vmem:[#allocation5 + $0x590] sm:$0xff] }
 0x115   : > { %1694 = vmatprep.subr.bf16.mxu1 %v710_v16  ;;  %v703_v0 = vpack.c.bf16 %v523_v43, %v518_v6  ;;  %v489_v6 = vld [vmem:[#allocation5 + $0x5b8] sm:$0xff]  ;;  %v494_v43 = vld [vmem:[#allocation5 + $0x5e0] sm:$0xff] }
 0x116   : > { %v689_v63 = vpack.c.bf16 %v494_v43, %v489_v6  ;;  %v290_v6 = vld [vmem:[%s2093_s18 + $0x2a0] sm:$0xff]  ;;  %v295_v43 = vld [vmem:[%s2093_s18 + $0x2c8] sm:$0xff] }
 0x119   : > { %1657 = vmatmul.mubr.bf16.gmra.mxu0 %v2311_v12  ;;  %1156 = vmatmul.mubr.bf16.gmra.mxu1 %v2141_v51  ;;  %v2327_v51 = vpack.c.bf16 %v245_v57, %v240_v56  ;;  %v2343_v56 = vpack.c.bf16 %v265_v40, %v260_v38  ;;  %v490_v57 = vld [vmem:[#allocation5 + $0x5c0] sm:$0xff] }
 0x11a   : > { %1231 = vmatpush1.bf16.xpose.msra.mxu0 %v708_v37  ;;  %1658 = vmatprep.mubr.bf16.mxu0 %v2319_v27  ;;  %v694_v37 = vpack.c.bf16 %v504_v24, %v499_v23  ;;  %v280_v24 = vld [vmem:[%s2093_s18 + $0x250] sm:$0xff]  ;;  %v470_v40 = vld [vmem:[#allocation5 + $0x520] sm:$0xff] }
 0x11b   : > { %1163 = vmatprep.mubr.bf16.mxu1 %v2145_v59  ;;  %1232 = vmatprep.subr.bf16.mxu0 %v704_v42  ;;  %v700_v59 = vpack.c.bf16 %v515_v3, %v510_v2  ;;  %v498_v42 = vld [vmem:[#allocation5 + $0x600] sm:$0xff]  ;;  %v275_v2 = vld [vmem:[%s2093_s18 + $0x228] sm:$0xff]  ;;  %v488_v3 = vld [vmem:[#allocation5 + $0x5b0] sm:$0xff] }
 0x11c   : > { %1695 = vmatpush3.bf16.xpose.msra.mxu1 %v710_v16  ;;  %v508_v16 = vld [vmem:[#allocation5 + $0x650] sm:$0xff] }
 0x11d   : > { %1696 = vmatprep.subr.bf16.mxu1 %v705_v35  ;;  %v698_v34 = vpack.c.bf16 %v513_v18, %v508_v16  ;;  %v480_v16 = vld [vmem:[#allocation5 + $0x570] sm:$0xff] }
 0x121   : > { %1659 = vmatmul.mubr.bf16.gmra.mxu0 %v2319_v27  ;;  %1164 = vmatmul.mubr.bf16.gmra.mxu1 %v2161_v11  ;;  %v505_v11 = vld [vmem:[#allocation5 + $0x638] sm:$0xff] }
 0x122   : > { %1233 = vmatpush1.bf16.xpose.msra.mxu0 %v703_v0  ;;  %1660 = vmatprep.mubr.bf16.mxu0 %v2327_v51  ;;  %v270_v0 = vld [vmem:[%s2093_s18 + $0x200] sm:$0xff] }
 0x123   : > { %1171 = vmatprep.mubr.bf16.mxu1 %v2165_v21  ;;  %1234 = vmatprep.subr.bf16.mxu0 %v699_v4  ;;  %v695_v21 = vpack.c.bf16 %v505_v11, %v500_v28  ;;  %v493_v4 = vld [vmem:[#allocation5 + $0x5d8] sm:$0xff]  ;;  %v2351_v13 = vpack.c.bf16 %v275_v2, %v270_v0  ;;  %v478_v11 = vld [vmem:[#allocation5 + $0x560] sm:$0xff] }
 0x124   : > { %1697 = vmatpush3.bf16.xpose.msra.mxu1 %v705_v35  ;;  %v503_v35 = vld [vmem:[#allocation5 + $0x628] sm:$0xff]  ;;  %v688_v18 = vpack.c.bf16 %v493_v4, %v488_v3  ;;  %v285_v28 = vld [vmem:[%s2093_s18 + $0x278] sm:$0xff] }
 0x125   : > { %1698 = vmatprep.subr.bf16.mxu1 %v700_v59  ;;  %v693_v58 = vpack.c.bf16 %v503_v35, %v498_v42  ;;  %v585_v38 = vpack.c.bf16 %v285_v28, %v280_v24  ;;  %v475_v42 = vld [vmem:[#allocation5 + $0x548] sm:$0xff] }
 0x129   : > { %1661 = vmatmul.mubr.bf16.gmra.mxu0 %v2327_v51  ;;  %1172 = vmatmul.mubr.bf16.gmra.mxu1 %v2181_v41  ;;  %v495_v41 = vld [vmem:[#allocation5 + $0x5e8] sm:$0xff] }
 0x12a   : > { %1662 = vmatprep.mubr.bf16.mxu0 %v2335_v26  ;;  %1179 = vmatprep.mubr.bf16.mxu1 %v2185_v46  ;;  %v690_v46 = vpack.c.bf16 %v495_v41, %v490_v57  ;;  %v468_v57 = vld [vmem:[#allocation5 + $0x510] sm:$0xff]  ;;  %v473_v41 = vld [vmem:[#allocation5 + $0x538] sm:$0xff] }
 0x12b   : > { %1235 = vmatpush1.bf16.xpose.msra.mxu0 %v698_v34  ;;  %v483_v34 = vld [vmem:[#allocation5 + $0x588] sm:$0xff] }
 0x12c   : > { %1236 = vmatprep.subr.bf16.mxu0 %v694_v37  ;;  %1699 = vmatpush3.bf16.xpose.msra.mxu1 %v700_v59  ;;  %v479_v59 = vld [vmem:[#allocation5 + $0x568] sm:$0xff]  ;;  %v469_v37 = vld [vmem:[#allocation5 + $0x518] sm:$0xff] }
 0x12d   : > { %1700 = vmatprep.subr.bf16.mxu1 %v695_v21  ;;  %v684_v23 = vpack.c.bf16 %v484_v7, %v479_v59 }
 0x131   : > { %1663 = vmatmul.mubr.bf16.gmra.mxu0 %v2335_v26  ;;  %1180 = vmatmul.mubr.bf16.gmra.mxu1 %v2201_v5  ;;  %v485_v5 = vld [vmem:[#allocation5 + $0x598] sm:$0xff] }
 0x132   : > { %1664 = vmatprep.mubr.bf16.mxu0 %v2343_v56  ;;  %1187 = vmatprep.mubr.bf16.mxu1 %v2205_v10  ;;  %v685_v10 = vpack.c.bf16 %v485_v5, %v480_v16 }
 0x133   : > { %1237 = vmatpush1.bf16.xpose.msra.mxu0 %v693_v58  ;;  %v590_v58 = vpack.c.bf16 %v295_v43, %v290_v6 }
 0x134   : > { %1701 = vmatpush3.bf16.xpose.msra.mxu1 %v695_v21  ;;  %1238 = vmatprep.subr.bf16.mxu0 %v689_v63  ;;  %v474_v21 = vld [vmem:[#allocation5 + $0x540] sm:$0xff]  ;;  %v678_v63 = vpack.c.bf16 %v473_v41, %v468_v57 }
 0x135   : > { %1702 = vmatprep.subr.bf16.mxu1 %v690_v46  ;;  %v679_v35 = vpack.c.bf16 %v474_v21, %v469_v37 }
 0x139   : > { %1665 = vmatmul.mubr.bf16.gmra.mxu0 %v2343_v56  ;;  %1188 = vmatmul.mubr.bf16.gmra.mxu1 %v2221_v39  ;;  %v683_v39 = vpack.c.bf16 %v483_v34, %v478_v11 }
 0x13a   : > { %1666 = vmatprep.mubr.bf16.mxu0 %v2351_v13  ;;  %1195 = vmatprep.mubr.bf16.mxu1 %v2225_v47  ;;  %v680_v47 = vpack.c.bf16 %v475_v42, %v470_v40 }
 0x13b   : > { %1239 = vmatpush1.bf16.xpose.msra.mxu0 %v688_v18 }
 0x13c   : > { %1703 = vmatpush3.bf16.xpose.msra.mxu1 %v690_v46  ;;  %1240 = vmatprep.subr.bf16.mxu0 %v684_v23  ;;  %v305_v46 = vld [vmem:[%s2093_s18 + $0x318] sm:$0xff] }
 0x13d   : > { %1704 = vmatprep.subr.bf16.mxu1 %v685_v10 }
 0x141   : > { %1667 = vmatmul.mubr.bf16.gmra.mxu0 %v2351_v13  ;;  %1196 = vmatmul.mubr.bf16.gmra.mxu1 %v2241_v8  ;;  %v300_v8 = vld [vmem:[%s2093_s18 + $0x2f0] sm:$0xff] }
 0x142   : > { %1668 = vmatprep.mubr.bf16.mxu0 %v585_v38  ;;  %1203 = vmatprep.mubr.bf16.mxu1 %v2245_v20  ;;  %v595_v20 = vpack.c.bf16 %v305_v46, %v300_v8 }
 0x143   : > { %1241 = vmatpush1.bf16.xpose.msra.mxu0 %v683_v39 }
 0x144   : > { %1705 = vmatpush3.bf16.xpose.msra.mxu1 %v685_v10  ;;  %1242 = vmatprep.subr.bf16.mxu0 %v679_v35 }
 0x145   : > { %1706 = vmatprep.subr.bf16.mxu1 %v680_v47 }
 0x149   : > { %1669 = vmatmul.mubr.bf16.gmra.mxu0 %v585_v38  ;;  %1204 = vmatmul.mubr.bf16.gmra.mxu1 %v2261_v54 }
 0x14a   : > { %1670 = vmatprep.mubr.bf16.mxu0 %v590_v58  ;;  %1211 = vmatprep.mubr.bf16.mxu1 %v2265_v62 }
 0x14b   : > { %1243 = vmatpush1.bf16.xpose.msra.mxu0 %v678_v63 }
 0x14c   : > { %1707 = vmatpush3.bf16.xpose.msra.mxu1 %v680_v47 }
 0x151   : > { %1671 = vmatmul.mubr.bf16.gmra.mxu0 %v590_v58  ;;  %1212 = vmatmul.mubr.bf16.gmra.mxu1 %v2281_v29 }
 0x152   : > { %1672 = vmatprep.mubr.bf16.mxu0 %v595_v20  ;;  %1219 = vmatprep.mubr.bf16.mxu1 %v2285_v32 }
 0x159   : > { %1673 = vmatmul.mubr.bf16.gmra.mxu0 %v595_v20  ;;  %1220 = vmatmul.mubr.bf16.gmra.mxu1 %v2299_v48 }
 0x15a   : > { %1260 = vmatprep.mubr.bf16.mxu0 %v2109_v19  ;;  %1708 = vmatprep.mubr.bf16.mxu1 %v2303_v53 }
 0x161   : > { %1261 = vmatmul.mubr.bf16.vlgmr.msra.gmra.mxu0 %v2123_v31  ;;  %1709 = vmatmul.mubr.bf16.vlgmr.msra.gmra.mxu1 %v2311_v12 }
 0x162   : > { %1268 = vmatprep.mubr.bf16.mxu0 %v2127_v36  ;;  %1712 = vmatprep.mubr.bf16.mxu1 %v2319_v27 }
 0x169   : > { %1269 = vmatmul.mubr.bf16.gmra.mxu0 %v2143_v55  ;;  %1713 = vmatmul.mubr.bf16.gmra.mxu1 %v2327_v51 }
 0x16a   : > { %1276 = vmatprep.mubr.bf16.mxu0 %v2147_v60  ;;  %1716 = vmatprep.mubr.bf16.mxu1 %v2335_v26 }
 0x171   : > { %1277 = vmatmul.mubr.bf16.gmra.mxu0 %v2163_v15  ;;  %1717 = vmatmul.mubr.bf16.gmra.mxu1 %v2343_v56 }
 0x172   : > { %1284 = vmatprep.mubr.bf16.mxu0 %v2167_v22  ;;  %1720 = vmatprep.mubr.bf16.mxu1 %v2351_v13 }
 0x179   : > { %1285 = vmatmul.mubr.bf16.gmra.mxu0 %v2183_v45  ;;  %1721 = vmatmul.mubr.bf16.gmra.mxu1 %v585_v38 }
 0x17a   : > { %1292 = vmatprep.mubr.bf16.mxu0 %v2187_v49  ;;  %1724 = vmatprep.mubr.bf16.mxu1 %v590_v58 }
 0x181   : > { %v750_v19 = vpop.f32.mrf.mxu0  ;;  %1293 = vmatmul.mubr.bf16.gmra.mxu0 %v2203_v9  ;;  %v883_v31 = vpop.f32.mrf.mxu1  ;;  %1725 = vmatmul.mubr.bf16.gmra.mxu1 %v595_v20 }
 0x182   : > { %1300 = vmatprep.mubr.bf16.mxu0 %v2207_v14  ;;  %v2389_v36 = vadd.f32 %v883_v31, %v750_v19 }
 0x183   : > { %v752_v55 = vpop.f32.mrf.mxu0  ;;  %v885_v60 = vpop.f32.mrf.mxu1 }
 0x184   : > { %v2391_v15 = vadd.f32 %v885_v60, %v752_v55 }
 0x185   : > { %v754_v22 = vpop.f32.mrf.mxu0  ;;  %v887_v54 = vpop.f32.mrf.mxu1 }
 0x186   : > { %v2393_v45 = vadd.f32 %v887_v54, %v754_v22 }
 0x187   : > { %v756_v49 = vpop.f32.mrf.mxu0  ;;  %v889_v62 = vpop.f32.mrf.mxu1 }
 0x188   : > { %v2395_v29 = vadd.f32 %v889_v62, %v756_v49 }
 0x189   : > { %v760_v32 = vpop.f32.mrf.mxu0  ;;  %1301 = vmatmul.mubr.bf16.gmra.mxu0 %v2223_v44  ;;  %v893_v9 = vpop.f32.mrf.mxu1 }
 0x18a   : > { %1308 = vmatprep.mubr.bf16.mxu0 %v2227_v52  ;;  %v2399_v14 = vadd.f32 %v893_v9, %v760_v32 }
 0x18b   : > { %v762_v48 = vpop.f32.mrf.mxu0  ;;  %v895_v53 = vpop.f32.mrf.mxu1 }
 0x18c   : > { %v2401_v12 = vadd.f32 %v895_v53, %v762_v48 }
 0x18d   : > { %v764_v27 = vpop.f32.mrf.mxu0  ;;  %v897_v51 = vpop.f32.mrf.mxu1 }
 0x18e   : > { %v2403_v26 = vadd.f32 %v897_v51, %v764_v27 }
 0x18f   : > { %v766_v56 = vpop.f32.mrf.mxu0  ;;  %v899_v0 = vpop.f32.mrf.mxu1 }
 0x190   : > { %v2405_v2 = vadd.f32 %v899_v0, %v766_v56 }
 0x191   : > { %v770_v3 = vpop.f32.mrf.mxu0  ;;  %1309 = vmatmul.mubr.bf16.gmra.mxu0 %v2243_v17  ;;  %v903_v44 = vpop.f32.mrf.mxu1 }
 0x192   : > { %1316 = vmatprep.mubr.bf16.mxu0 %v2247_v25  ;;  %v2409_v52 = vadd.f32 %v903_v44, %v770_v3 }
 0x193   : > { %v772_v4 = vpop.f32.mrf.mxu0  ;;  %v905_v59 = vpop.f32.mrf.mxu1 }
 0x194   : > { %v2411_v7 = vadd.f32 %v905_v59, %v772_v4 }
 0x195   : > { %v774_v13 = vpop.f32.mrf.mxu0  ;;  %v907_v16 = vpop.f32.mrf.mxu1 }
 0x196   : > { %v2413_v5 = vadd.f32 %v907_v16, %v774_v13 }
 0x197   : > { %v776_v18 = vpop.f32.mrf.mxu0  ;;  %v909_v23 = vpop.f32.mrf.mxu1 }
 0x198   : > { %v2415_v10 = vadd.f32 %v909_v23, %v776_v18 }
 0x199   : > { %v780_v24 = vpop.f32.mrf.mxu0  ;;  %1317 = vmatmul.mubr.bf16.gmra.mxu0 %v2263_v61  ;;  %v913_v17 = vpop.f32.mrf.mxu1 }
 0x19a   : > { %1324 = vmatprep.mubr.bf16.mxu0 %v2267_v1  ;;  %v2419_v25 = vadd.f32 %v913_v17, %v780_v24 }
 0x19b   : > { %v782_v28 = vpop.f32.mrf.mxu0  ;;  %v915_v11 = vpop.f32.mrf.mxu1 }
 0x19c   : > { %v2421_v34 = vadd.f32 %v915_v11, %v782_v28 }
 0x19d   : > { %v784_v37 = vpop.f32.mrf.mxu0  ;;  %v917_v21 = vpop.f32.mrf.mxu1 }
 0x19e   : > { %v2423_v38 = vadd.f32 %v917_v21, %v784_v37 }
 0x19f   : > { %v786_v40 = vpop.f32.mrf.mxu0  ;;  %v919_v42 = vpop.f32.mrf.mxu1 }
 0x1a0   : > { %v2425_v39 = vadd.f32 %v919_v42, %v786_v40 }
 0x1a1   : > { %v790_v35 = vpop.f32.mrf.mxu0  ;;  %1325 = vmatmul.mubr.bf16.gmra.mxu0 %v2283_v30  ;;  %v923_v61 = vpop.f32.mrf.mxu1 }
 0x1a2   : > { %1332 = vmatprep.mubr.bf16.mxu0 %v2287_v33  ;;  %v2429_v1 = vadd.f32 %v923_v61, %v790_v35 }
 0x1a3   : > { %v792_v47 = vpop.f32.mrf.mxu0  ;;  %v925_v6 = vpop.f32.mrf.mxu1 }
 0x1a4   : > { %v2431_v43 = vadd.f32 %v925_v6, %v792_v47 }
 0x1a5   : > { %v794_v57 = vpop.f32.mrf.mxu0  ;;  %v927_v41 = vpop.f32.mrf.mxu1 }
 0x1a6   : > { %v2433_v58 = vadd.f32 %v927_v41, %v794_v57 }
 0x1a7   : > { %v796_v63 = vpop.f32.mrf.mxu0  ;;  %v929_v8 = vpop.f32.mrf.mxu1 }
 0x1a8   : > { %v2435_v46 = vadd.f32 %v929_v8, %v796_v63 }
 0x1a9   : > { %v800_v20 = vpop.f32.mrf.mxu0  ;;  %1333 = vmatmul.mubr.bf16.gmra.mxu0 %v2301_v50  ;;  %v933_v30 = vpop.f32.mrf.mxu1 }
 0x1aa   : > { %v2438_v19 = vadd.f32 %v933_v30, %v800_v20 }
 0x1ab   : > { %v802_v33 = vpop.f32.mrf.mxu0  ;;  %v935_v31 = vpop.f32.mrf.mxu1 }
 0x1ac   : > { %v2440_v55 = vadd.f32 %v935_v31, %v802_v33 }
 0x1ad   : > { %v804_v60 = vpop.f32.mrf.mxu0  ;;  %v937_v22 = vpop.f32.mrf.mxu1 }
 0x1ae   : > { %v2442_v54 = vadd.f32 %v937_v22, %v804_v60 }
 0x1af   : > { %v806_v49 = vpop.f32.mrf.mxu0  ;;  %v939_v62 = vpop.f32.mrf.mxu1 }
 0x1b0   : > { %v2444_v32 = vadd.f32 %v939_v62, %v806_v49 }
 0x1b1   : > { %v810_v9 = vpop.f32.mrf.mxu0  ;;  %v943_v48 = vpop.f32.mrf.mxu1 }
 0x1b2   : > { %v2446_v53 = vadd.f32 %v943_v48, %v810_v9 }
 0x1b3   : > { %v812_v50 = vpop.f32.mrf.mxu0  ;;  %v945_v27 = vpop.f32.mrf.mxu1 }
 0x1b4   : > { %v2448_v51 = vadd.f32 %v945_v27, %v812_v50 }
 0x1b5   : > { %v814_v56 = vpop.f32.mrf.mxu0  ;;  %v947_v0 = vpop.f32.mrf.mxu1 }
 0x1b6   : > { %v2450_v3 = vadd.f32 %v947_v0, %v814_v56 }
 0x1b7   : > { %v816_v44 = vpop.f32.mrf.mxu0  ;;  %v949_v4 = vpop.f32.mrf.mxu1 }
 0x1b8   : > { %v2452_v59 = vadd.f32 %v949_v4, %v816_v44 }
 0x1b9   : > { %v820_v13 = vpop.f32.mrf.mxu0  ;;  %v953_v16 = vpop.f32.mrf.mxu1 }
 0x1ba   : > { %v2454_v18 = vadd.f32 %v953_v16, %v820_v13 }
 0x1bb   : > { %v822_v23 = vpop.f32.mrf.mxu0  ;;  %v955_v24 = vpop.f32.mrf.mxu1 }
 0x1bc   : > { %v2456_v17 = vadd.f32 %v955_v24, %v822_v23 }
 0x1bd   : > { %v824_v28 = vpop.f32.mrf.mxu0  ;;  %v957_v11 = vpop.f32.mrf.mxu1 }
 0x1be   : > { %v2458_v37 = vadd.f32 %v957_v11, %v824_v28 }
 0x1bf   : > { %v826_v21 = vpop.f32.mrf.mxu0  ;;  %v959_v40 = vpop.f32.mrf.mxu1 }
 0x1c0   : > { %v2460_v42 = vadd.f32 %v959_v40, %v826_v21 }
 0x1c1   : > { %v830_v35 = vpop.f32.mrf.mxu0  ;;  %v963_v61 = vpop.f32.mrf.mxu1 }
 0x1c2   : > { %v2462_v47 = vadd.f32 %v963_v61, %v830_v35 }
 0x1c3   : > { %v832_v6 = vpop.f32.mrf.mxu0  ;;  %v965_v57 = vpop.f32.mrf.mxu1 }
 0x1c4   : > { %v2464_v41 = vadd.f32 %v965_v57, %v832_v6 }
 0x1c5   : > { %v834_v63 = vpop.f32.mrf.mxu0  ;;  %v967_v8 = vpop.f32.mrf.mxu1 }
 0x1c6   : > { %v2466_v20 = vadd.f32 %v967_v8, %v834_v63 }
 0x1c7   : > { %v836_v30 = vpop.f32.mrf.mxu0  ;;  %v969_v33 = vpop.f32.mrf.mxu1 }
 0x1c8   : > { %v2468_v31 = vadd.f32 %v969_v33, %v836_v30 }
 0x1c9   : > { %v840_v60 = vpop.f32.mrf.mxu0  ;;  %v973_v22 = vpop.f32.mrf.mxu1 }
 0x1ca   : > { %v2470_v49 = vadd.f32 %v973_v22, %v840_v60 }
 0x1cb   : > { %v842_v62 = vpop.f32.mrf.mxu0  ;;  %v975_v9 = vpop.f32.mrf.mxu1 }
 0x1cc   : > { %v2472_v48 = vadd.f32 %v975_v9, %v842_v62 }
 0x1cd   : > { %v844_v50 = vpop.f32.mrf.mxu0  ;;  %v977_v27 = vpop.f32.mrf.mxu1 }
 0x1ce   : > { %v2475_v56 = vadd.f32 %v977_v27, %v844_v50 }
 0x1cf   : > { %v846_v0 = vpop.f32.mrf.mxu0  ;;  %v979_v44 = vpop.f32.mrf.mxu1 }
 0x1d0   : > { %v2477_v4 = vadd.f32 %v979_v44, %v846_v0 }
 0x1d1   : > { %v1016_v13 = vpop.f32.mrf.mxu0  ;;  %v2480_v23 = vpop.f32.mrf.mxu1 }
 0x1d2   : > { %v1017_v16 = vadd.f32 %v1016_v13, %v2389_v36 }
 0x1d3   : > { %v1018_v24 = vpop.f32.mrf.mxu0  ;;  %v1151_v11 = vpop.f32.mrf.mxu1 }
 0x1d4   : > { %1454 = vst [vmem:[%s2482_s19] sm:$0xff] %v1017_v16  ;;  %v1019_v28 = vadd.f32 %v1018_v24, %v2391_v15 }
 0x1d5   : > { %v1020_v21 = vpop.f32.mrf.mxu0  ;;  %v2488_v36 = vpop.f32.mrf.mxu1 }
 0x1d6   : > { %1455 = vst [vmem:[%s2482_s19 + $0x8] sm:$0xff] %v1019_v28  ;;  %v1021_v40 = vadd.f32 %v1020_v21, %v2393_v45 }
 0x1d7   : > { %v1022_v35 = vpop.f32.mrf.mxu0  ;;  %v1154_v6 = vpop.f32.mrf.mxu1 }
 0x1d8   : > { %1457 = vst [vmem:[%s2482_s19 + $0x18] sm:$0xff] %v1021_v40  ;;  %v1023_v61 = vadd.f32 %v1022_v35, %v2395_v29 }
 0x1d9   : > { %v1026_v57 = vpop.f32.mrf.mxu0  ;;  %v2494_v15 = vpop.f32.mrf.mxu1 }
 0x1da   : > { %1458 = vst [vmem:[%s2482_s19 + $0x20] sm:$0xff] %v1023_v61  ;;  %v1027_v63 = vadd.f32 %v1026_v57, %v2399_v14 }
 0x1db   : > { %v1028_v8 = vpop.f32.mrf.mxu0  ;;  %v1159_v30 = vpop.f32.mrf.mxu1 }
 0x1dc   : > { %1460 = vst [vmem:[%s2482_s19 + $0x30] sm:$0xff] %v1027_v63  ;;  %v1029_v45 = vadd.f32 %v1028_v8, %v2401_v12 }
 0x1dd   : > { %v1030_v33 = vpop.f32.mrf.mxu0  ;;  %v2500_v29 = vpop.f32.mrf.mxu1 }
 0x1de   : > { %1461 = vst [vmem:[%s2482_s19 + $0x38] sm:$0xff] %v1029_v45  ;;  %v1031_v60 = vadd.f32 %v1030_v33, %v2403_v26 }
 0x1df   : > { %v1032_v22 = vpop.f32.mrf.mxu0  ;;  %v1162_v62 = vpop.f32.mrf.mxu1 }
 0x1e0   : > { %1463 = vst [vmem:[%s2482_s19 + $0x48] sm:$0xff] %v1031_v60  ;;  %v1033_v14 = vadd.f32 %v1032_v22, %v2405_v2 }
 0x1e1   : > { %v1036_v9 = vpop.f32.mrf.mxu0  ;;  %v2506_v12 = vpop.f32.mrf.mxu1 }
 0x1e2   : > { %1464 = vst [vmem:[%s2482_s19 + $0x50] sm:$0xff] %v1033_v14  ;;  %v1037_v50 = vadd.f32 %v1036_v9, %v2409_v52 }
 0x1e3   : > { %v1038_v27 = vpop.f32.mrf.mxu0  ;;  %v1167_v0 = vpop.f32.mrf.mxu1 }
 0x1e4   : > { %1466 = vst [vmem:[%s2482_s19 + $0x60] sm:$0xff] %v1037_v50  ;;  %v1039_v26 = vadd.f32 %v1038_v27, %v2411_v7 }
 0x1e5   : > { %v1040_v44 = vpop.f32.mrf.mxu0  ;;  %v2512_v2 = vpop.f32.mrf.mxu1 }
 0x1e6   : > { %1467 = vst [vmem:[%s2482_s19 + $0x68] sm:$0xff] %v1039_v26  ;;  %v1041_v13 = vadd.f32 %v1040_v44, %v2413_v5 }
 0x1e7   : > { %v1042_v16 = vpop.f32.mrf.mxu0  ;;  %v1170_v24 = vpop.f32.mrf.mxu1 }
 0x1e8   : > { %1469 = vst [vmem:[%s2482_s19 + $0x78] sm:$0xff] %v1041_v13  ;;  %v1043_v52 = vadd.f32 %v1042_v16, %v2415_v10 }
 0x1e9   : > { %v1046_v28 = vpop.f32.mrf.mxu0  ;;  %v2518_v7 = vpop.f32.mrf.mxu1 }
 0x1ea   : > { %1470 = vst [vmem:[%s2482_s19 + $0x80] sm:$0xff] %v1043_v52  ;;  %v1047_v11 = vadd.f32 %v1046_v28, %v2419_v25 }
 0x1eb   : > { %v1048_v21 = vpop.f32.mrf.mxu0  ;;  %v1175_v40 = vpop.f32.mrf.mxu1 }
 0x1ec   : > { %1472 = vst [vmem:[%s2482_s19 + $0x90] sm:$0xff] %v1047_v11  ;;  %v1049_v5 = vadd.f32 %v1048_v21, %v2421_v34 }
 0x1ed   : > { %v1050_v35 = vpop.f32.mrf.mxu0  ;;  %v2524_v10 = vpop.f32.mrf.mxu1 }
 0x1ee   : > { %1473 = vst [vmem:[%s2482_s19 + $0x98] sm:$0xff] %v1049_v5  ;;  %v1051_v61 = vadd.f32 %v1050_v35, %v2423_v38 }
 0x1ef   : > { %v1052_v6 = vpop.f32.mrf.mxu0  ;;  %v1178_v57 = vpop.f32.mrf.mxu1 }
 0x1f0   : > { %1475 = vst [vmem:[%s2482_s19 + $0xa8] sm:$0xff] %v1051_v61  ;;  %v1053_v25 = vadd.f32 %v1052_v6, %v2425_v39 }
 0x1f1   : > { %v1056_v63 = vpop.f32.mrf.mxu0  ;;  %v2530_v34 = vpop.f32.mrf.mxu1 }
 0x1f2   : > { %1476 = vst [vmem:[%s2482_s19 + $0xb0] sm:$0xff] %v1053_v25  ;;  %v1057_v8 = vadd.f32 %v1056_v63, %v2429_v1 }
 0x1f3   : > { %v1058_v45 = vpop.f32.mrf.mxu0  ;;  %v1183_v30 = vpop.f32.mrf.mxu1 }
 0x1f4   : > { %1478 = vst [vmem:[%s2482_s19 + $0xc0] sm:$0xff] %v1057_v8  ;;  %v1059_v38 = vadd.f32 %v1058_v45, %v2431_v43 }
 0x1f5   : > { %v1060_v33 = vpop.f32.mrf.mxu0  ;;  %v2536_v39 = vpop.f32.mrf.mxu1 }
 0x1f6   : > { %1479 = vst [vmem:[%s2482_s19 + $0xc8] sm:$0xff] %v1059_v38  ;;  %v1061_v60 = vadd.f32 %v1060_v33, %v2433_v58 }
 0x1f7   : > { %v1062_v22 = vpop.f32.mrf.mxu0  ;;  %v1186_v14 = vpop.f32.mrf.mxu1 }
 0x1f8   : > { %1481 = vst [vmem:[%s2482_s19 + $0xd8] sm:$0xff] %v1061_v60  ;;  %v1063_v1 = vadd.f32 %v1062_v22, %v2435_v46 }
 0x1f9   : > { %v1066_v62 = vpop.f32.mrf.mxu0  ;;  %v2542_v43 = vpop.f32.mrf.mxu1 }
 0x1fa   : > { %1482 = vst [vmem:[%s2482_s19 + $0xe0] sm:$0xff] %v1063_v1  ;;  %v1067_v9 = vadd.f32 %v1066_v62, %v2438_v19 }
 0x1fb   : > { %v1068_v50 = vpop.f32.mrf.mxu0  ;;  %v1191_v27 = vpop.f32.mrf.mxu1 }
 0x1fc   : > { %1484 = vst [vmem:[%s2482_s19 + $0xf0] sm:$0xff] %v1067_v9  ;;  %v1069_v58 = vadd.f32 %v1068_v50, %v2440_v55 }
 0x1fd   : > { %v1070_v26 = vpop.f32.mrf.mxu0  ;;  %v2548_v46 = vpop.f32.mrf.mxu1 }
 0x1fe   : > { %1485 = vst [vmem:[%s2482_s19 + $0xf8] sm:$0xff] %v1069_v58  ;;  %v1071_v0 = vadd.f32 %v1070_v26, %v2442_v54 }
 0x1ff   : > { %v1072_v44 = vpop.f32.mrf.mxu0  ;;  %v1194_v13 = vpop.f32.mrf.mxu1 }
 0x200   : > { %1487 = vst [vmem:[%s2482_s19 + $0x108] sm:$0xff] %v1071_v0  ;;  %v1073_v19 = vadd.f32 %v1072_v44, %v2444_v32 }
 0x201   : > { %v1076_v16 = vpop.f32.mrf.mxu0  ;;  %v2554_v55 = vpop.f32.mrf.mxu1 }
 0x202   : > { %1488 = vst [vmem:[%s2482_s19 + $0x110] sm:$0xff] %v1073_v19  ;;  %v1077_v52 = vadd.f32 %v1076_v16, %v2446_v53 }
 0x203   : > { %v1078_v24 = vpop.f32.mrf.mxu0  ;;  %v1199_v28 = vpop.f32.mrf.mxu1 }
 0x204   : > { %1490 = vst [vmem:[%s2482_s19 + $0x120] sm:$0xff] %v1077_v52  ;;  %v1079_v54 = vadd.f32 %v1078_v24, %v2448_v51 }
 0x205   : > { %v1080_v11 = vpop.f32.mrf.mxu0  ;;  %v2560_v32 = vpop.f32.mrf.mxu1 }
 0x206   : > { %1491 = vst [vmem:[%s2482_s19 + $0x128] sm:$0xff] %v1079_v54  ;;  %v1081_v21 = vadd.f32 %v1080_v11, %v2450_v3 }
 0x207   : > { %v1082_v5 = vpop.f32.mrf.mxu0  ;;  %v1202_v40 = vpop.f32.mrf.mxu1 }
 0x208   : > { %1493 = vst [vmem:[%s2482_s19 + $0x138] sm:$0xff] %v1081_v21  ;;  %v1083_v53 = vadd.f32 %v1082_v5, %v2452_v59 }
 0x209   : > { %v1086_v35 = vpop.f32.mrf.mxu0  ;;  %v2566_v51 = vpop.f32.mrf.mxu1 }
 0x20a   : > { %1494 = vst [vmem:[%s2482_s19 + $0x140] sm:$0xff] %v1083_v53  ;;  %v1087_v61 = vadd.f32 %v1086_v35, %v2454_v18 }
 0x20b   : > { %v1088_v6 = vpop.f32.mrf.mxu0  ;;  %v1207_v25 = vpop.f32.mrf.mxu1 }
 0x20c   : > { %1496 = vst [vmem:[%s2482_s19 + $0x150] sm:$0xff] %v1087_v61  ;;  %v1089_v3 = vadd.f32 %v1088_v6, %v2456_v17 }
 0x20d   : > { %v1090_v57 = vpop.f32.mrf.mxu0  ;;  %v2572_v59 = vpop.f32.mrf.mxu1 }
 0x20e   : > { %1497 = vst [vmem:[%s2482_s19 + $0x158] sm:$0xff] %v1089_v3  ;;  %v1091_v63 = vadd.f32 %v1090_v57, %v2458_v37 }
 0x20f   : > { %v1092_v8 = vpop.f32.mrf.mxu0  ;;  %v1210_v45 = vpop.f32.mrf.mxu1 }
 0x210   : > { %1499 = vst [vmem:[%s2482_s19 + $0x168] sm:$0xff] %v1091_v63  ;;  %v1093_v18 = vadd.f32 %v1092_v8, %v2460_v42 }
 0x211   : > { %v1096_v38 = vpop.f32.mrf.mxu0  ;;  %v2578_v17 = vpop.f32.mrf.mxu1 }
 0x212   : > { %1500 = vst [vmem:[%s2482_s19 + $0x170] sm:$0xff] %v1093_v18  ;;  %v1097_v30 = vadd.f32 %v1096_v38, %v2462_v47 }
 0x213   : > { %v1098_v33 = vpop.f32.mrf.mxu0  ;;  %v1215_v60 = vpop.f32.mrf.mxu1 }
 0x214   : > { %1502 = vst [vmem:[%s2482_s19 + $0x180] sm:$0xff] %v1097_v30  ;;  %v1099_v37 = vadd.f32 %v1098_v33, %v2464_v41 }
 0x215   : > { %v1100_v22 = vpop.f32.mrf.mxu0  ;;  %v2584_v42 = vpop.f32.mrf.mxu1 }
 0x216   : > { %1503 = vst [vmem:[%s2482_s19 + $0x188] sm:$0xff] %v1099_v37  ;;  %v1101_v1 = vadd.f32 %v1100_v22, %v2466_v20 }
 0x217   : > { %v1102_v14 = vpop.f32.mrf.mxu0  ;;  %v1218_v62 = vpop.f32.mrf.mxu1 }
 0x218   : > { %1505 = vst [vmem:[%s2482_s19 + $0x198] sm:$0xff] %v1101_v1  ;;  %v1103_v47 = vadd.f32 %v1102_v14, %v2468_v31 }
 0x219   : > { %v1106_v9 = vpop.f32.mrf.mxu0  ;;  %v2590_v41 = vpop.f32.mrf.mxu1 }
 0x21a   : > { %1506 = vst [vmem:[%s2482_s19 + $0x1a0] sm:$0xff] %v1103_v47  ;;  %v1107_v50 = vadd.f32 %v1106_v9, %v2470_v49 }
 0x21b   : > { %v1108_v58 = vpop.f32.mrf.mxu0  ;;  %v1223_v20 = vpop.f32.mrf.mxu1 }
 0x21c   : > { %1508 = vst [vmem:[%s2482_s19 + $0x1b0] sm:$0xff] %v1107_v50  ;;  %v1109_v27 = vadd.f32 %v1108_v58, %v2472_v48 }
 0x21d   : > { %v1110_v26 = vpop.f32.mrf.mxu0  ;;  %v2596_v44 = vpop.f32.mrf.mxu1 }
 0x21e   : > { %1509 = vst [vmem:[%s2482_s19 + $0x1b8] sm:$0xff] %v1109_v27  ;;  %v1111_v0 = vadd.f32 %v1110_v26, %v2475_v56 }
 0x21f   : > { %v1112_v31 = vpop.f32.mrf.mxu0  ;;  %v1226_v13 = vpop.f32.mrf.mxu1 }
 0x220   : > { %1511 = vst [vmem:[%s2482_s19 + $0x1c8] sm:$0xff] %v1111_v0  ;;  %v1113_v19 = vadd.f32 %v1112_v31, %v2477_v4 }
 0x221   : > { %v1262_v49 = vpop.f32.mrf.mxu0  ;;  %v1710_v52 = vpop.f32.mrf.mxu1 }
 0x222   : > { %1512 = vst [vmem:[%s2482_s19 + $0x1d0] sm:$0xff] %v1113_v19  ;;  %v1263_v16 = vadd.f32 %v1262_v49, %v2480_v23 }
 0x223   : > { %v1264_v48 = vpop.f32.mrf.mxu0  ;;  %v1375_v24 = vpop.f32.mrf.mxu1 }
 0x224   : > { %v1376_v54 = vadd.f32 %v1375_v24, %v1263_v16 }
 0x225   : > { %v1265_v28 = vpop.f32.mrf.mxu0  ;;  %v1711_v11 = vpop.f32.mrf.mxu1 }
 0x226   : > { %v1266_v56 = vadd.f32 %v1265_v28, %v2488_v36  ;;  %1456 = vst [vmem:[%s2482_s19 + $0x10] sm:$0xff] %v1376_v54 }
 0x227   : > { %v1267_v21 = vpop.f32.mrf.mxu0  ;;  %v1378_v5 = vpop.f32.mrf.mxu1 }
 0x228   : > { %v1379_v4 = vadd.f32 %v1378_v5, %v1266_v56 }
 0x229   : > { %v1270_v53 = vpop.f32.mrf.mxu0  ;;  %v1714_v35 = vpop.f32.mrf.mxu1 }
 0x22a   : > { %v1271_v40 = vadd.f32 %v1270_v53, %v2494_v15  ;;  %1459 = vst [vmem:[%s2482_s19 + $0x28] sm:$0xff] %v1379_v4 }
 0x22b   : > { %v1272_v23 = vpop.f32.mrf.mxu0  ;;  %v1391_v3 = vpop.f32.mrf.mxu1 }
 0x22c   : > { %v1384_v61 = vadd.f32 %v1710_v52, %v1271_v40 }
 0x22d   : > { %v1273_v6 = vpop.f32.mrf.mxu0  ;;  %v1715_v8 = vpop.f32.mrf.mxu1 }
 0x22e   : > { %1462 = vst [vmem:[%s2482_s19 + $0x40] sm:$0xff] %v1384_v61  ;;  %v1274_v25 = vadd.f32 %v1273_v6, %v2500_v29 }
 0x22f   : > { %v1275_v36 = vpop.f32.mrf.mxu0  ;;  %v1394_v30 = vpop.f32.mrf.mxu1 }
 0x230   : > { %v1387_v57 = vadd.f32 %v1711_v11, %v1274_v25 }
 0x231   : > { %v1278_v63 = vpop.f32.mrf.mxu0  ;;  %v1718_v22 = vpop.f32.mrf.mxu1 }
 0x232   : > { %1465 = vst [vmem:[%s2482_s19 + $0x58] sm:$0xff] %v1387_v57  ;;  %v1279_v18 = vadd.f32 %v1278_v63, %v2506_v12 }
 0x233   : > { %v1280_v45 = vpop.f32.mrf.mxu0  ;;  %v1407_v62 = vpop.f32.mrf.mxu1 }
 0x234   : > { %v1392_v15 = vadd.f32 %v1391_v3, %v1279_v18 }
 0x235   : > { %v1281_v38 = vpop.f32.mrf.mxu0  ;;  %v1719_v27 = vpop.f32.mrf.mxu1 }
 0x236   : > { %1468 = vst [vmem:[%s2482_s19 + $0x70] sm:$0xff] %v1392_v15  ;;  %v1282_v33 = vadd.f32 %v1281_v38, %v2512_v2 }
 0x237   : > { %v1283_v37 = vpop.f32.mrf.mxu0  ;;  %v1410_v31 = vpop.f32.mrf.mxu1 }
 0x238   : > { %v1395_v60 = vadd.f32 %v1394_v30, %v1282_v33 }
 0x239   : > { %v1286_v29 = vpop.f32.mrf.mxu0  ;;  %v1722_v16 = vpop.f32.mrf.mxu1 }
 0x23a   : > { %1471 = vst [vmem:[%s2482_s19 + $0x88] sm:$0xff] %v1395_v60  ;;  %v1287_v1 = vadd.f32 %v1286_v29, %v2518_v7 }
 0x23b   : > { %v1288_v14 = vpop.f32.mrf.mxu0  ;;  %v1423_v54 = vpop.f32.mrf.mxu1 }
 0x23c   : > { %v1400_v47 = vadd.f32 %v1714_v35, %v1287_v1 }
 0x23d   : > { %v1289_v12 = vpop.f32.mrf.mxu0  ;;  %v1723_v21 = vpop.f32.mrf.mxu1 }
 0x23e   : > { %1474 = vst [vmem:[%s2482_s19 + $0xa0] sm:$0xff] %v1400_v47  ;;  %v1290_v9 = vadd.f32 %v1289_v12, %v2524_v10 }
 0x23f   : > { %v1291_v50 = vpop.f32.mrf.mxu0  ;;  %v1426_v40 = vpop.f32.mrf.mxu1 }
 0x240   : > { %v1403_v58 = vadd.f32 %v1715_v8, %v1290_v9 }
 0x241   : > { %v1294_v2 = vpop.f32.mrf.mxu0  ;;  %v1726_v6 = vpop.f32.mrf.mxu1 }
 0x242   : > { %1477 = vst [vmem:[%s2482_s19 + $0xb8] sm:$0xff] %v1403_v58  ;;  %v1295_v20 = vadd.f32 %v1294_v2, %v2530_v34 }
 0x243   : > { %v1296_v26 = vpop.f32.mrf.mxu0  ;;  %v1439_v57 = vpop.f32.mrf.mxu1 }
 0x244   : > { %v1408_v0 = vadd.f32 %v1407_v62, %v1295_v20 }
 0x245   : > { %v1297_v7 = vpop.f32.mrf.mxu0  ;;  %v1727_v45 = vpop.f32.mrf.mxu1 }
 0x246   : > { %1480 = vst [vmem:[%s2482_s19 + $0xd0] sm:$0xff] %v1408_v0  ;;  %v1298_v19 = vadd.f32 %v1297_v7, %v2536_v39 }
 0x247   : > { %v1299_v13 = vpop.f32.mrf.mxu0  ;;  %v1442_v33 = vpop.f32.mrf.mxu1 }
 0x248   : > { %v1411_v49 = vadd.f32 %v1410_v31, %v1298_v19 }
 0x249   : > { %v1302_v10 = vpop.f32.mrf.mxu0 }
 0x24a   : > { %1483 = vst [vmem:[%s2482_s19 + $0xe8] sm:$0xff] %v1411_v49  ;;  %v1303_v52 = vadd.f32 %v1302_v10, %v2542_v43 }
 0x24b   : > { %v1304_v48 = vpop.f32.mrf.mxu0 }
 0x24c   : > { %v1416_v24 = vadd.f32 %v1718_v22, %v1303_v52 }
 0x24d   : > { %v1305_v34 = vpop.f32.mrf.mxu0 }
 0x24e   : > { %1486 = vst [vmem:[%s2482_s19 + $0x100] sm:$0xff] %v1416_v24  ;;  %v1306_v28 = vadd.f32 %v1305_v34, %v2548_v46 }
 0x24f   : > { %v1307_v56 = vpop.f32.mrf.mxu0 }
 0x250   : > { %v1419_v11 = vadd.f32 %v1719_v27, %v1306_v28 }
 0x251   : > { %v1310_v39 = vpop.f32.mrf.mxu0 }
 0x252   : > { %1489 = vst [vmem:[%s2482_s19 + $0x118] sm:$0xff] %v1419_v11  ;;  %v1311_v5 = vadd.f32 %v1310_v39, %v2554_v55 }
 0x253   : > { %v1312_v4 = vpop.f32.mrf.mxu0 }
 0x254   : > { %v1424_v53 = vadd.f32 %v1423_v54, %v1311_v5 }
 0x255   : > { %v1313_v43 = vpop.f32.mrf.mxu0 }
 0x256   : > { %1492 = vst [vmem:[%s2482_s19 + $0x130] sm:$0xff] %v1424_v53  ;;  %v1314_v35 = vadd.f32 %v1313_v43, %v2560_v32 }
 0x257   : > { %v1315_v23 = vpop.f32.mrf.mxu0 }
 0x258   : > { %v1427_v61 = vadd.f32 %v1426_v40, %v1314_v35 }
 0x259   : > { %v1318_v46 = vpop.f32.mrf.mxu0 }
 0x25a   : > { %1495 = vst [vmem:[%s2482_s19 + $0x148] sm:$0xff] %v1427_v61  ;;  %v1319_v3 = vadd.f32 %v1318_v46, %v2566_v51 }
 0x25b   : > { %v1320_v25 = vpop.f32.mrf.mxu0 }
 0x25c   : > { %v1432_v36 = vadd.f32 %v1722_v16, %v1319_v3 }
 0x25d   : > { %v1321_v55 = vpop.f32.mrf.mxu0 }
 0x25e   : > { %1498 = vst [vmem:[%s2482_s19 + $0x160] sm:$0xff] %v1432_v36  ;;  %v1322_v63 = vadd.f32 %v1321_v55, %v2572_v59 }
 0x25f   : > { %v1323_v8 = vpop.f32.mrf.mxu0 }
 0x260   : > { %v1435_v18 = vadd.f32 %v1723_v21, %v1322_v63 }
 0x261   : > { %v1326_v32 = vpop.f32.mrf.mxu0 }
 0x262   : > { %1501 = vst [vmem:[%s2482_s19 + $0x178] sm:$0xff] %v1435_v18  ;;  %v1327_v15 = vadd.f32 %v1326_v32, %v2578_v17 }
 0x263   : > { %v1328_v38 = vpop.f32.mrf.mxu0 }
 0x264   : > { %v1440_v51 = vadd.f32 %v1439_v57, %v1327_v15 }
 0x265   : > { %v1329_v30 = vpop.f32.mrf.mxu0 }
 0x266   : > { %1504 = vst [vmem:[%s2482_s19 + $0x190] sm:$0xff] %v1440_v51  ;;  %v1330_v37 = vadd.f32 %v1329_v30, %v2584_v42 }
 0x267   : > { %v1331_v60 = vpop.f32.mrf.mxu0 }
 0x268   : > { %v1443_v59 = vadd.f32 %v1442_v33, %v1330_v37 }
 0x269   : > { %v1334_v29 = vpop.f32.mrf.mxu0 }
 0x26a   : > { %1507 = vst [vmem:[%s2482_s19 + $0x1a8] sm:$0xff] %v1443_v59  ;;  %v1335_v22 = vadd.f32 %v1334_v29, %v2590_v41 }
 0x26b   : > { %v1336_v1 = vpop.f32.mrf.mxu0 }
 0x26c   : > { %v1448_v17 = vadd.f32 %v1726_v6, %v1335_v22 }
 0x26d   : > { %v1337_v14 = vpop.f32.mrf.mxu0 }
 0x26e   : > { %1510 = vst [vmem:[%s2482_s19 + $0x1c0] sm:$0xff] %v1448_v17  ;;  %v1338_v47 = vadd.f32 %v1337_v14, %v2596_v44 }
 0x26f   : > { %v1339_v12 = vpop.f32.mrf.mxu0 }
 0x270   : > { %v1451_v42 = vadd.f32 %v1727_v45, %v1338_v47 }
 0x272   : > { %1513 = vst [vmem:[%s2482_s19 + $0x1d8] sm:$0xff] %v1451_v42 }
 0x273   : > { %1879 = shalt.err (!%p1876_p4)
}
 0x274   : > { %s1880_s3 = scalar_lea.hbm %s2645_s23, 7680  ;;  %s1884_s15 = scalar_lea.hbm %s2698_s2, 15360 }
 0x275   : > { %p1881_p6 = scmp.ne.s32.totalorder %s2645_s23, %s1880_s3  ;;  %p1885_p0 = scmp.lt.s32.totalorder %s2645_s23, %s2698_s2 }
 0x276   : > { %p1886_p3 = scmp.lt.s32.totalorder %s1884_s15, %s1880_s3 }
 0x277   : > { %p1882_p9 = pnand %p1881_p6, %p2060_p13 }
 0x278   : > { %p1887_p1 = por %p1886_p3, %p1885_p0 }
 0x279   : > { %p1883_p12 = pneg %p1882_p9 }
 0x27b   : > { %p1888_p8 = pnand %p1887_p1, %p1883_p12 }
 0x27d   : > { %1891 = shalt.err (!%p1888_p8)
}
 0x27e   : > { %s1957_s17 = smov 384   ;;  %s1958_s19 = smov 24  }
 0x27f   : > { %1739 = dma.vmem_to_hbm [thread:$0]  (%p2060_p13), %s2647_s27, 7680, %s2645_s23, %s1515_s12, %s1957_s17, %s1957_s17, %s1958_s19  }
 0x280 PF: > { %s1546_s21 = sand.u32 1, %s1930_s9   ;;  %p2709_p11 = scmp.ne.s32.totalorder %s2703_s20, 0 }
 0x281   : > { %s1547_s28 = scalar_lea.sflag [#allocation4], %s1546_s21 }
 0x282   : > { %p1750_p2 = pnand %p1631_p10, %p2709_p11 }
 0x284   : > { %p1751_p5 = pneg %p1750_p2 }
 0x286   : > { %1925 = dma.done.wait (%p1751_p5), %s1547_s28, 7680  }
 0x287   : > { %1927 = vsyncadd (%p1751_p5), %s1547_s28, 4294959616  ;;  %s19_s14 = sadd.s32 1, %s1950_s14   ;;  %s2710_s9 = smov %s1934_s10 }
 0x288   : > { %p16_p7 = scmp.ge.s32.totalorder %s19_s14, 4   ;;  %s2711_s10 = smov %s1938_s11 }
 0x289   : > { %s2712_s11 = smov %s2069_s8  ;;  %s2713_s12 = smov %s1946_s13 }
 0x28a   : > { %s2714_s13 = smov %s2716_s25  ;;  %18 = sbr.rel (!%p16_p7) target bundleno = 7 (0x7), region = 78 }
 0x28f   :  { %1552 = vsyncpa [#allocation3], 1 }
 0x290   :  { %1554 = vsyncpa [#allocation3 + $0x1], 1 }
 0x291   :  { %1555 = vsyncpa [#allocation6], 1 }
 0x292   :  { %1556 = vsyncpa [#allocation4], 1 }
 0x293   :  { %1558 = vsyncpa [#allocation4 + $0x1], 1 }

</bundles_post_ra>
